<compile_context>
chip_gen: v6e
topology: v6e:2x2x1
jax: 0.10.0
libtpu: 0.0.40
codegen_flags: <defaults>
</compile_context>

<pallas_src>
import jax
import jax.numpy as jnp
from jax import lax
from jax.experimental import pallas as pl
from jax.experimental.pallas import tpu as pltpu


VMEM_LIMIT = 48 * 1024 * 1024
HEADS = ('diff', 'normal', 'rough', 'spec')


# ---------------------------------------------------------------------------
# Fused, head-batched matmul kernel:
#   O[g] = act_out( act_in(A[g])[M,K] @ B[g][K,N] )
# A/B are bf16, accumulation is f32 in a VMEM scratch, output is cast to
# out_dtype (bf16 for hidden activations, f32 for the tanh outputs).
# ---------------------------------------------------------------------------
def _make_matmul_kernel(act_in, act_out):
    def kernel(a_ref, b_ref, o_ref, acc_ref):
        @pl.when(pl.program_id(3) == 0)
        def _init():
            acc_ref[...] = jnp.zeros_like(acc_ref)

        a = a_ref[0]
        if act_in == "leaky":
            a = jnp.where(a >= 0, a, a * 0.2)
        acc_ref[...] += jnp.dot(a, b_ref[0],
                                preferred_element_type=jnp.float32)

        @pl.when(pl.program_id(3) == pl.num_programs(3) - 1)
        def _finalize():
            r = acc_ref[...]
            if act_out == "leaky":
                r = jnp.where(r >= 0, r, r * 0.2)
            elif act_out == "tanh":
                r = jnp.tanh(r)
            o_ref[0] = r.astype(o_ref.dtype)

    return kernel


def _pick_tile(dim, cap):
    """Largest tile <= cap that divides dim (dim itself if dim <= cap)."""
    if dim <= cap:
        return dim
    t = cap
    while dim % t:
        t //= 2
    return t


def matmul(a, b, act_in=None, act_out=None, out_dtype=jnp.bfloat16):
    """a:(G,M,K) bf16, b:(G,K,N) bf16 -> (G,M,N) out_dtype (f32 accumulate)."""
    G, M, K = a.shape
    N = b.shape[-1]
    Mp = M if M % 8 == 0 else ((M + 7) // 8) * 8
    if Mp != M:
        a = jnp.pad(a, ((0, 0), (0, Mp - M), (0, 0)))

    tm = _pick_tile(Mp, 1024)
    tk = _pick_tile(K, 2048)
    tn = _pick_tile(N, 512)
    grid = (G, Mp // tm, N // tn, K // tk)

    out = pl.pallas_call(
        _make_matmul_kernel(act_in, act_out),
        out_shape=jax.ShapeDtypeStruct((G, Mp, N), out_dtype),
        grid_spec=pltpu.PrefetchScalarGridSpec(
            num_scalar_prefetch=0,
            grid=grid,
            in_specs=[pl.BlockSpec((1, tm, tk), lambda g, i, j, k: (g, i, k)),
                      pl.BlockSpec((1, tk, tn), lambda g, i, j, k: (g, k, j))],
            out_specs=pl.BlockSpec((1, tm, tn), lambda g, i, j, k: (g, i, j)),
            scratch_shapes=[pltpu.VMEM((tm, tn), jnp.float32)]),
        compiler_params=pltpu.CompilerParams(
            dimension_semantics=("parallel", "parallel", "parallel",
                                 "arbitrary"),
            vmem_limit_bytes=VMEM_LIMIT),
    )(a, b)
    return out[:, :M] if Mp != M else out


# ---------------------------------------------------------------------------
# InstanceNorm2d (affine, eps=1e-5, biased variance), head-batched.
# x:(G,B,H,W,C) bf16, gamma/beta:(G,C) f32 -> bf16.  Stats per (g,b,c).
# ---------------------------------------------------------------------------
def _instance_norm_kernel(x_ref, g_ref, b_ref, o_ref):
    x = x_ref[...].astype(jnp.float32)                     # (1,1,HW,C)
    mean = jnp.mean(x, axis=2, keepdims=True)
    var = jnp.mean(jnp.square(x - mean), axis=2, keepdims=True)
    y = (x - mean) * lax.rsqrt(var + 1e-5) * g_ref[...] + b_ref[...]
    o_ref[...] = y.astype(o_ref.dtype)


def instance_norm(x, gamma, beta):
    G, B, H, W, C = x.shape
    hw = H * W
    out = pl.pallas_call(
        _instance_norm_kernel,
        out_shape=jax.ShapeDtypeStruct((G, B, hw, C), jnp.bfloat16),
        grid_spec=pltpu.PrefetchScalarGridSpec(
            num_scalar_prefetch=0,
            grid=(G, B),
            in_specs=[pl.BlockSpec((1, 1, hw, C), lambda g, b: (g, b, 0, 0)),
                      pl.BlockSpec((1, 1, 1, C), lambda g, b: (g, 0, 0, 0)),
                      pl.BlockSpec((1, 1, 1, C), lambda g, b: (g, 0, 0, 0))],
            out_specs=pl.BlockSpec((1, 1, hw, C), lambda g, b: (g, b, 0, 0))),
        compiler_params=pltpu.CompilerParams(
            dimension_semantics=("parallel", "arbitrary"),
            vmem_limit_bytes=VMEM_LIMIT),
    )(x.reshape(G, B, hw, C), gamma.reshape(G, 1, 1, C),
      beta.reshape(G, 1, 1, C))
    return out.reshape(G, B, H, W, C)


def dropout(x):
    # TODO(synk): nn.Dropout(0.5) in training mode is RNG-dependent; applied
    # as identity (eval-mode semantics) here.
    return x


# ---------------------------------------------------------------------------
# Conv (NHWC, no bias) via bf16 im2col + fused matmul kernel.
# w is the pre-flattened weight (G, kh*kw*Cin, O), rows ordered (kh, kw, cin).
# ---------------------------------------------------------------------------
def conv2d(x, w, kh, kw, stride, pad, act_in=None, act_out=None,
           out_dtype=jnp.bfloat16):
    G, B, H, W, C = x.shape
    O = w.shape[-1]
    (pad_t, pad_b), (pad_l, pad_r) = pad
    x = x.astype(jnp.bfloat16)                    # bf16 BEFORE pad/slice/concat
    xp = jnp.pad(x, ((0, 0), (0, 0), (pad_t, pad_b), (pad_l, pad_r), (0, 0)))
    Ho = (H + pad_t + pad_b - kh) // stride + 1
    Wo = (W + pad_l + pad_r - kw) // stride + 1
    taps = [xp[:, :, di:di + stride * Ho:stride, dj:dj + stride * Wo:stride, :]
            for di in range(kh) for dj in range(kw)]
    patches = jnp.concatenate(taps, axis=-1)      # (G,B,Ho,Wo,kh*kw*C) bf16
    a = patches.reshape(G, B * Ho * Wo, kh * kw * C)
    out = matmul(a, w, act_in=act_in, act_out=act_out, out_dtype=out_dtype)
    return out.reshape(G, B, Ho, Wo, O)


_PAD_ENC = ((1, 1), (1, 1))      # Conv2d(..., padding=1)
_PAD_DEC = ((1, 2), (1, 2))      # ConstantPad2d((1, 2, 1, 2))


def _deconv_core(x, w1, w2, act_out2=None, out_dtype2=jnp.bfloat16):
    """Deconv module: nearest 2x upsample + pad + 4x4 conv, twice.  The
    LeakyReLU applied to the module input is fused into the first conv's A
    tile (valid: leaky(0)==0 commutes with upsample / zero-pad / im2col)."""
    G, B, H, W, C = x.shape
    up = jnp.broadcast_to(x[:, :, :, None, :, None, :],
                          (G, B, H, 2, W, 2, C)).reshape(G, B, 2 * H, 2 * W, C)
    y = conv2d(up, w1, 4, 4, 1, _PAD_DEC, act_in="leaky")
    return conv2d(y, w2, 4, 4, 1, _PAD_DEC, act_out=act_out2,
                  out_dtype=out_dtype2)


# --------------------------- jitted building blocks ------------------------
@jax.jit
def encoder_first(x, w):
    return conv2d(x, w, 4, 4, 2, _PAD_ENC)


@jax.jit
def encoder_block(x, w, gamma, beta):
    return instance_norm(conv2d(x, w, 4, 4, 2, _PAD_ENC, act_in="leaky"),
                         gamma, beta)


@jax.jit
def encoder_last(x, w):
    return conv2d(x, w, 4, 4, 2, _PAD_ENC, act_in="leaky")


@jax.jit
def deconv_first_all(x, w1, w2, gamma, beta):
    # x: (4,B,1,1,512) (encoder8 broadcast over heads); weights stacked (4,...)
    return instance_norm(_deconv_core(x, w1, w2), gamma, beta)


@jax.jit
def deconv_stage_all(d_prev, skip, w1, w2, gamma, beta):
    # d_prev: (4,B,H,W,Cd) ; skip: (1,B,H,W,Cs) shared across heads
    g = d_prev.shape[0]
    skip_b = jnp.broadcast_to(skip, (g,) + skip.shape[1:])
    x = jnp.concatenate([d_prev, skip_b], axis=-1)
    return instance_norm(_deconv_core(x, w1, w2), gamma, beta)


@jax.jit
def deconv_last_head(d_prev, skip, w1, w2):
    # per-head final stage (output channel count may differ per head)
    x = jnp.concatenate([d_prev, skip], axis=-1)
    return _deconv_core(x, w1, w2, act_out2="tanh", out_dtype2=jnp.float32)


# ---------------------------------------------------------------------------
# Light-position MLP: 6 FC layers fused into ONE Pallas kernel.
# ---------------------------------------------------------------------------
def _fc_head_kernel(*refs):
    n = (len(refs) - 2) // 2
    x_ref = refs[0]
    w_refs = refs[1:1 + n]
    b_refs = refs[1 + n:-1]
    o_ref = refs[-1]
    h = x_ref[...]                                          # bf16 (8, 512)
    for i in range(n):
        h = jnp.dot(h, w_refs[i][...], preferred_element_type=jnp.float32)
        h = h + b_refs[i][...]
        if i < n - 1:
            h = jnp.where(h >= 0, h, h * 0.2).astype(jnp.bfloat16)
    o_ref[...] = h.astype(o_ref.dtype)


@jax.jit
def light_head(flat, fc_params):
    B = flat.shape[0]
    Bp = ((B + 7) // 8) * 8
    x = jnp.pad(flat.astype(jnp.bfloat16), ((0, Bp - B), (0, 0)))
    ws = [w for w, _ in fc_params]
    bs = [b.reshape(1, -1).astype(jnp.float32) for _, b in fc_params]
    n_out = ws[-1].shape[-1]
    out = pl.pallas_call(
        _fc_head_kernel,
        out_shape=jax.ShapeDtypeStruct((Bp, n_out), jnp.float32),
        grid_spec=pltpu.PrefetchScalarGridSpec(
            num_scalar_prefetch=0,
            grid=(1,),
            in_specs=([pl.BlockSpec(x.shape, lambda i: (0, 0))]
                      + [pl.BlockSpec(w.shape, lambda i: (0, 0)) for w in ws]
                      + [pl.BlockSpec(b.shape, lambda i: (0, 0)) for b in bs]),
            out_specs=pl.BlockSpec((Bp, n_out), lambda i: (0, 0))),
        compiler_params=pltpu.CompilerParams(
            dimension_semantics=("arbitrary",),
            vmem_limit_bytes=VMEM_LIMIT),
    )(x, *ws, *bs)
    return out[:B]


# ---------------------------------------------------------------------------
# Deterministic parameter construction (shapes from NewVA_Net_Light.__init__)
# ---------------------------------------------------------------------------
def _conv_mat(key, o, i, k=4, scale=0.05):
    w = scale * jax.random.normal(key, (o, i, k, k), jnp.float32)
    # rows ordered (kh, kw, cin) to match the tap-major / channel-minor im2col
    return w.transpose(2, 3, 1, 0).reshape(k * k * i, o).astype(jnp.bfloat16)


def _in_params(key, c):
    k1, k2 = jax.random.split(key)
    return (1.0 + 0.1 * jax.random.normal(k1, (c,), jnp.float32),
            0.1 * jax.random.normal(k2, (c,), jnp.float32))


def _fc_params(key, o, i):
    k1, k2 = jax.random.split(key)
    w = 0.05 * jax.random.normal(k1, (o, i), jnp.float32)
    b = 0.05 * jax.random.normal(k2, (o,), jnp.float32)
    return (w.T.astype(jnp.bfloat16), b)                    # stored (in, out)


def build_params(key, input_channel, output_channel, rough_channel):
    keys = iter(jax.random.split(key, 512))
    p = {}
    enc = [(64, input_channel), (128, 64), (256, 128), (512, 256),
           (512, 512), (512, 512), (512, 512), (512, 512)]
    for idx, (o, i) in enumerate(enc, start=1):
        p[f'conv{idx}'] = _conv_mat(next(keys), o, i)[None]          # (1,K,N)
    for idx, c in zip(range(2, 8), [128, 256, 512, 512, 512, 512]):
        g, b = _in_params(next(keys), c)
        p[f'in{idx}'] = (g[None], b[None])                           # (1,C)

    # Decoder stages 1..7: weights / IN params stacked over the 4 heads.
    dec_io = [(512, 512), (1024, 512), (1024, 512), (1024, 512),
              (1024, 256), (512, 128), (256, 64)]
    dec_c = [512, 512, 512, 512, 256, 128, 64]
    heads = {}
    for idx, (ic, oc) in enumerate(dec_io, start=1):
        heads[f'deconv{idx}_w1'] = jnp.stack(
            [_conv_mat(next(keys), oc, ic) for _ in HEADS])          # (4,16ic,oc)
        heads[f'deconv{idx}_w2'] = jnp.stack(
            [_conv_mat(next(keys), oc, oc) for _ in HEADS])
    for idx, c in enumerate(dec_c, start=1):
        gb = [_in_params(next(keys), c) for _ in HEADS]
        heads[f'in{idx}_g'] = jnp.stack([g for g, _ in gb])          # (4,C)
        heads[f'in{idx}_b'] = jnp.stack([b for _, b in gb])
    p['heads'] = heads

    # Stage 8 per head (rough may have a different output channel count).
    d8 = {}
    for name in HEADS:
        oc = rough_channel if name == 'rough' else output_channel
        d8[name] = (_conv_mat(next(keys), oc, 128)[None],
                    _conv_mat(next(keys), oc, oc)[None])
    p['deconv8'] = d8

    fc_io = [(256, 512), (128, 256), (64, 128), (32, 64), (16, 32), (3, 16)]
    p['fc'] = tuple(_fc_params(next(keys), o, i) for o, i in fc_io)
    return p


# ---------------------------------------------------------------------------
# Forward pass (mirrors NewVA_Net_Light.forward); I/O in NCHW like PyTorch.
# ---------------------------------------------------------------------------
def new_va_net_light_forward(params, x_nchw, rough_channel):
    x = jnp.transpose(x_nchw, (0, 2, 3, 1))[None]             # (1,B,H,W,C)

    e1 = encoder_first(x, params['conv1'])
    e2 = encoder_block(e1, params['conv2'], *params['in2'])
    e3 = encoder_block(e2, params['conv3'], *params['in3'])
    e4 = encoder_block(e3, params['conv4'], *params['in4'])
    e5 = encoder_block(e4, params['conv5'], *params['in5'])
    e6 = encoder_block(e5, params['conv6'], *params['in6'])
    e7 = encoder_block(e6, params['conv7'], *params['in7'])
    e8 = encoder_last(e7, params['conv8'])                     # (1,B,1,1,512)

    skips = [e7, e6, e5, e4, e3, e2, e1]
    hp = params['heads']

    # Decoder stages 1..7 run all 4 heads in one batched call per stage.
    e8_heads = jnp.broadcast_to(e8, (len(HEADS),) + e8.shape[1:])
    d = deconv_first_all(e8_heads, hp['deconv1_w1'], hp['deconv1_w2'],
                         hp['in1_g'], hp['in1_b'])
    d = dropout(d)
    for idx in range(2, 8):
        d = deconv_stage_all(d, skips[idx - 2],
                             hp[f'deconv{idx}_w1'], hp[f'deconv{idx}_w2'],
                             hp[f'in{idx}_g'], hp[f'in{idx}_b'])
        if idx <= 3:
            d = dropout(d)

    # Stage 8 per head (tanh fused; f32 outputs).
    outs = {}
    for h_idx, name in enumerate(HEADS):
        w1, w2 = params['deconv8'][name]
        outs[name] = deconv_last_head(d[h_idx:h_idx + 1], skips[6], w1, w2)

    rough = outs['rough']
    if rough_channel == 1:
        rough = jnp.tile(rough, (1, 1, 1, 1, 3))
    out_nhwc = jnp.concatenate(
        [outs['normal'], outs['diff'], rough, outs['spec']], axis=-1)[0]
    output = jnp.transpose(out_nhwc, (0, 3, 1, 2))             # -> NCHW

    flat = e8.reshape(e8.shape[1], -1)                         # (B, 512)
    light_po = light_head(flat, params['fc'])                  # (B, 3)
    return output, light_po


# ---------------------------------------------------------------------------
if __name__ == "__main__":
    key = jax.random.PRNGKey(0)
    k_in, k_par = jax.random.split(key)

    # The architecture fixes the spatial size: 8 stride-2 convs must reduce
    # the input to 1x1 so that FC1 sees 512 = 512*1*1 features, forcing a
    # 256x256 input.  batch=1 / 3 channels is the smallest valid run.
    input_channel, output_channel, rough_channel = 3, 3, 1
    x = jax.random.normal(k_in, (1, input_channel, 256, 256), jnp.float32)

    params = build_params(k_par, input_channel, output_channel, rough_channel)
    output, light_po = new_va_net_light_forward(params, x, rough_channel)
    jax.block_until_ready((output, light_po))

    assert output.shape == (1, 4 * output_channel, 256, 256)
    assert light_po.shape == (1, 3)
    print("KERNEL_OK")
</pallas_src>

<mosaic_0001>
module attributes {stable_mosaic.version = 11 : i64} {
  func.func @kernel(%arg0: i32, %arg1: i32, %arg2: i32, %arg3: i32, %arg4: memref<1x1024x48xbf16, #tpu.memory_space<vmem>>, %arg5: memref<1x48x64xbf16, #tpu.memory_space<vmem>>, %arg6: memref<1x1024x64xbf16, #tpu.memory_space<vmem>>, %arg7: memref<1024x64xf32, #tpu.memory_space<vmem>>) attributes {dimension_semantics = [#tpu.dimension_semantics<parallel>, #tpu.dimension_semantics<parallel>, #tpu.dimension_semantics<parallel>, #tpu.dimension_semantics<arbitrary>], iteration_bounds = array<i64: 1, 16, 1, 1>, scalar_prefetch = 0 : i64, scratch_operands = 1 : i64, tpu.core_type = #tpu.core_type<tc>, window_params = [{transform_indices = @transform_0, window_bounds = array<i64: 1, 1024, 48>}, {transform_indices = @transform_1, window_bounds = array<i64: 1, 48, 64>}, {transform_indices = @transform_2, window_bounds = array<i64: 1, 1024, 64>}]} {
    %c0_i32 = arith.constant 0 : i32
    %0 = arith.cmpi eq, %arg3, %c0_i32 : i32
    %1 = arith.extui %0 : i1 to i32
    %c0_i32_0 = arith.constant 0 : i32
    %2 = arith.cmpi ne, %1, %c0_i32_0 : i32
    scf.if %2 {
      %cst_12 = arith.constant 0.000000e+00 : f32
      %14 = vector.broadcast %cst_12 : f32 to vector<1024x64xf32>
      %c0_13 = arith.constant 0 : index
      %c0_14 = arith.constant 0 : index
      %15 = vector.load %arg7[%c0_13, %c0_14] : memref<1024x64xf32, #tpu.memory_space<vmem>>, vector<1024x64xf32>
      tpu.vector_store %arg7[%c0_13, %c0_14], %14 {strides = array<i32>} : memref<1024x64xf32, #tpu.memory_space<vmem>>, vector<1024x64xf32>,
    } else {
    }
    %c0 = arith.constant 0 : index
    %c0_1 = arith.constant 0 : index
    %c0_2 = arith.constant 0 : index
    %3 = vector.load %arg4[%c0, %c0_1, %c0_2] : memref<1x1024x48xbf16, #tpu.memory_space<vmem>>, vector<1x1024x48xbf16>
    %4 = vector.shape_cast %3 : vector<1x1024x48xbf16> to vector<1024x48xbf16>
    %c0_3 = arith.constant 0 : index
    %c0_4 = arith.constant 0 : index
    %5 = vector.load %arg7[%c0_3, %c0_4] : memref<1024x64xf32, #tpu.memory_space<vmem>>, vector<1024x64xf32>
    %c0_5 = arith.constant 0 : index
    %c0_6 = arith.constant 0 : index
    %c0_7 = arith.constant 0 : index
    %6 = vector.load %arg5[%c0_5, %c0_6, %c0_7] : memref<1x48x64xbf16, #tpu.memory_space<vmem>>, vector<1x48x64xbf16>
    %7 = vector.shape_cast %6 : vector<1x48x64xbf16> to vector<48x64xbf16>
    %cst = arith.constant dense<0.000000e+00> : vector<1024x64xf32>
    %8 = tpu.matmul %4, %7, %cst {dimension_numbers = #tpu.dot_dimension_numbers<[1], [0], [0], [1], [0, 0, 1, 1], [], []>} : vector<1024x48xbf16>, vector<48x64xbf16>, vector<1024x64xf32> -> vector<1024x64xf32>
    %9 = arith.addf %5, %8 : vector<1024x64xf32>
    %c0_8 = arith.constant 0 : index
    %c0_9 = arith.constant 0 : index
    %10 = vector.load %arg7[%c0_8, %c0_9] : memref<1024x64xf32, #tpu.memory_space<vmem>>, vector<1024x64xf32>
    tpu.vector_store %arg7[%c0_8, %c0_9], %9 {strides = array<i32>} : memref<1024x64xf32, #tpu.memory_space<vmem>>, vector<1024x64xf32>,
    %c0_i32_10 = arith.constant 0 : i32
    %11 = arith.cmpi eq, %arg3, %c0_i32_10 : i32
    %12 = arith.extui %11 : i1 to i32
    %c0_i32_11 = arith.constant 0 : i32
    %13 = arith.cmpi ne, %12, %c0_i32_11 : i32
    scf.if %13 {
      %c0_12 = arith.constant 0 : index
      %c0_13 = arith.constant 0 : index
      %14 = vector.load %arg7[%c0_12, %c0_13] : memref<1024x64xf32, #tpu.memory_space<vmem>>, vector<1024x64xf32>
      %15 = arith.truncf %14 : vector<1024x64xf32> to vector<1024x64xbf16>
      %c0_14 = arith.constant 0 : index
      %c0_15 = arith.constant 0 : index
      %c0_16 = arith.constant 0 : index
      %16 = vector.load %arg6[%c0_14, %c0_15, %c0_16] : memref<1x1024x64xbf16, #tpu.memory_space<vmem>>, vector<1x1024x64xbf16>
      %17 = vector.shape_cast %16 : vector<1x1024x64xbf16> to vector<1024x64xbf16>
      %18 = vector.shape_cast %15 : vector<1024x64xbf16> to vector<1x1024x64xbf16>
      tpu.vector_store %arg6[%c0_14, %c0_15, %c0_16], %18 {strides = array<i32>} : memref<1x1024x64xbf16, #tpu.memory_space<vmem>>, vector<1x1024x64xbf16>,
    } else {
    }
    return
  }
  func.func @transform_0(%arg0: i32, %arg1: i32, %arg2: i32, %arg3: i32) -> (i32, i32, i32) {
    %c0_i32 = arith.constant 0 : i32
    return %arg0, %arg1, %arg3 : i32, i32, i32
  }
  func.func @transform_1(%arg0: i32, %arg1: i32, %arg2: i32, %arg3: i32) -> (i32, i32, i32) {
    %c0_i32 = arith.constant 0 : i32
    return %arg0, %arg3, %arg2 : i32, i32, i32
  }
  func.func @transform_2(%arg0: i32, %arg1: i32, %arg2: i32, %arg3: i32) -> (i32, i32, i32) {
    %c0_i32 = arith.constant 0 : i32
    return %arg0, %arg1, %arg2 : i32, i32, i32
  }
}

</mosaic_0001>

<bundles_post_ra>
// kernel: encoder_first.1
= control target key start
LH: loop header
LB: loop body
LE: loop exit
PB: predicated region body
PF: predicated region fallthrough
CT: control target
= control target key end

     0   :  { %s3632_s9 = smov 0   ;;  %s3634_s10 = smov 0   ;;  %s4462_s0 = inlined_call_operand.vmem [shape: bf16[1,16384,48], index: 0, kind: input, shape index: {}]   ;;  %s4463_s1 = inlined_call_operand.vmem [shape: bf16[1,48,64], index: 1, kind: input, shape index: {}]   ;;  %s4464_s2 = inlined_call_operand.vmem [shape: bf16[1,16384,64], index: 2, kind: output, shape index: {}]  }
   0x1   :  { %s3636_s11 = smov 0  }
   0x2 LB: > { %s34_s12 = sadd.s32 1, %s3610_s10  ;;  %p2899_p0 = scmp.ge.s32.totalorder %s3614_s11, 1  ;;  %s3614_s11 = sphi %s3636_s11, %s12_s11   ;;  %s3610_s10 = sphi %s3634_s10, %s4466_s10   ;;  %s3606_s9 = sphi %s3632_s9, %s4465_s9  }
   0x3   : > { %p36_p1 = scmp.ge.s32.totalorder %s34_s12, 16  ;;  %p176_p2 = scmp.lt.s32.totalorder %s3614_s11, 17 }
   0x5   : > { %s4468_s12 = smov (%p36_p1, %s34_s12), 0  ;;  %p177_p3 = pnand %p2899_p0, %p176_p2 }
   0x6   : > { %s2900_s15 = sshll.u32 (!%p177_p3), %s3606_s9, 7 }
   0x7   : > { %180 = sbr.rel (%p177_p3) target bundleno = 378 (0x17a), region = 28  ;;  %p227_p4 = scmp.lt.s32.totalorder (!%p177_p3), %s2900_s15, 2047 }
   0xc   : > { %v3525_v0 = vld [vmem:[%s4463_s1 + $0x10] sm:$0xff]   ;;  %v3526_v1 = vld [vmem:[%s4463_s1 + $0x8] sm:$0xff]   ;;  %s4470_s15 = smov (!%p227_p4, %s2900_s15), 2047  ;;  %v3661_v2 = vld [vmem:[%s4463_s1] sm:$0xff]   ;;  %vm997_vm0 = vcmask 392192   ;;  %vm268_vm1 = vcmask 523264  }
   0xd   : > { %3360 = vmatprep.subr.bf16.mxu0 %v3525_v0  ;;  %3494 = vmatprep.subr.bf16.mxu1 %v3525_v0  ;;  %s2901_s20 = sshll.u32 %s4470_s15, 2  ;;  %v3616_v4 = vmov 0.0   ;;  %vm2635_vm2 = vcmask 519168  }
   0xe   : > { %3361 = vmatpush3.bf16.msra.mxu0 %v3525_v0  ;;  %3497 = vmatpush3.bf16.msra.mxu1 %v3525_v0  ;;  %s3669_s23 = scalar_lea.vmem %s4462_s0, %s2901_s20  ;;  %271 = vst.msk [vmem:[#allocation2 + $0x10] sm:$0xff] %vm268_vm1, %v3616_v4  ;;  %269 = vst.msk [vmem:[#allocation2] sm:$0xff] %vm268_vm1, %v3616_v4  ;;  %s4075_s26 = scalar_lea.vmem %s4464_s2, %s2901_s20 }
   0xf   : > { %3362 = vmatprep.subr.bf16.mxu0 %v3526_v1  ;;  %3495 = vmatprep.subr.bf16.mxu1 %v3526_v1  ;;  %v3672_v3 = vld [vmem:[%s3669_s23] sm:$0xff]   ;;  %270 = vst.msk [vmem:[#allocation2 + $0x8] sm:$0xff] %vm268_vm1, %v3616_v4  ;;  %272 = vst.msk [vmem:[#allocation2 + $0x18] sm:$0xff] %vm268_vm1, %v3616_v4  ;;  %v3530_v6 = vld [vmem:[%s3669_s23 + $0x8] sm:$0xff]  }
  0x10   : > { %273 = vst.msk [vmem:[#allocation2 + $0x20] sm:$0xff] %vm268_vm1, %v3616_v4  ;;  %274 = vst.msk [vmem:[#allocation2 + $0x28] sm:$0xff] %vm268_vm1, %v3616_v4  ;;  %v3529_v5 = vld [vmem:[%s3669_s23 + $0x100] sm:$0xff]   ;;  %3366 = vmatprep.mubr.msk.bf16.mxu0 %vm997_vm0, %v3672_v3  ;;  %v3531_v7 = vld [vmem:[%s3669_s23 + $0x108] sm:$0xff]  }
  0x11   : > { %275 = vst.msk [vmem:[#allocation2 + $0x30] sm:$0xff] %vm268_vm1, %v3616_v4  ;;  %276 = vst.msk [vmem:[#allocation2 + $0x38] sm:$0xff] %vm268_vm1, %v3616_v4  ;;  %3430 = vmatprep.mubr.msk.bf16.mxu1 %vm997_vm0, %v3529_v5  ;;  %v3532_v8 = vld [vmem:[%s3669_s23 + $0x10] sm:$0xff]   ;;  %v3534_v10 = vld [vmem:[%s3669_s23 + $0x18] sm:$0xff]  }
  0x12   : > { %3363 = vmatpush3.bf16.msra.mxu0 %v3526_v1  ;;  %3498 = vmatpush3.bf16.msra.mxu1 %v3526_v1  ;;  %277 = vst.msk [vmem:[#allocation2 + $0x40] sm:$0xff] %vm268_vm1, %v3616_v4  ;;  %278 = vst.msk [vmem:[#allocation2 + $0x48] sm:$0xff] %vm268_vm1, %v3616_v4  ;;  %v3533_v9 = vld [vmem:[%s3669_s23 + $0x110] sm:$0xff]   ;;  %v3535_v11 = vld [vmem:[%s3669_s23 + $0x118] sm:$0xff]  }
  0x13   : > { %279 = vst.msk [vmem:[#allocation2 + $0x50] sm:$0xff] %vm268_vm1, %v3616_v4  ;;  %280 = vst.msk [vmem:[#allocation2 + $0x58] sm:$0xff] %vm268_vm1, %v3616_v4  ;;  %3364 = vmatprep.subr.bf16.mxu0 %v3661_v2  ;;  %3496 = vmatprep.subr.bf16.mxu1 %v3661_v2  ;;  %v3536_v12 = vld [vmem:[%s3669_s23 + $0x20] sm:$0xff]   ;;  %v3538_v14 = vld [vmem:[%s3669_s23 + $0x28] sm:$0xff]  }
  0x14   : > { %281 = vst.msk [vmem:[#allocation2 + $0x60] sm:$0xff] %vm268_vm1, %v3616_v4  ;;  %282 = vst.msk [vmem:[#allocation2 + $0x68] sm:$0xff] %vm268_vm1, %v3616_v4  ;;  %v3537_v13 = vld [vmem:[%s3669_s23 + $0x120] sm:$0xff]   ;;  %v3539_v15 = vld [vmem:[%s3669_s23 + $0x128] sm:$0xff]  }
  0x15   : > { %283 = vst.msk [vmem:[#allocation2 + $0x70] sm:$0xff] %vm268_vm1, %v3616_v4  ;;  %284 = vst.msk [vmem:[#allocation2 + $0x78] sm:$0xff] %vm268_vm1, %v3616_v4  ;;  %v3540_v16 = vld [vmem:[%s3669_s23 + $0x30] sm:$0xff]   ;;  %v3542_v18 = vld [vmem:[%s3669_s23 + $0x38] sm:$0xff]  }
  0x16   : > { %285 = vst.msk [vmem:[#allocation2 + $0x80] sm:$0xff] %vm268_vm1, %v3616_v4  ;;  %286 = vst.msk [vmem:[#allocation2 + $0x88] sm:$0xff] %vm268_vm1, %v3616_v4  ;;  %3365 = vmatpush3.bf16.msra.mxu0 %v3661_v2  ;;  %3499 = vmatpush3.bf16.msra.mxu1 %v3661_v2  ;;  %v3541_v17 = vld [vmem:[%s3669_s23 + $0x130] sm:$0xff]   ;;  %v3543_v19 = vld [vmem:[%s3669_s23 + $0x138] sm:$0xff]  }
  0x17   : > { %287 = vst.msk [vmem:[#allocation2 + $0x90] sm:$0xff] %vm268_vm1, %v3616_v4  ;;  %288 = vst.msk [vmem:[#allocation2 + $0x98] sm:$0xff] %vm268_vm1, %v3616_v4  ;;  %v3544_v20 = vld [vmem:[%s3669_s23 + $0x40] sm:$0xff]   ;;  %v3546_v22 = vld [vmem:[%s3669_s23 + $0x48] sm:$0xff]  }
  0x18   : > { %289 = vst.msk [vmem:[#allocation2 + $0xa0] sm:$0xff] %vm268_vm1, %v3616_v4  ;;  %290 = vst.msk [vmem:[#allocation2 + $0xa8] sm:$0xff] %vm268_vm1, %v3616_v4  ;;  %v3545_v21 = vld [vmem:[%s3669_s23 + $0x140] sm:$0xff]   ;;  %v3547_v23 = vld [vmem:[%s3669_s23 + $0x148] sm:$0xff]  }
  0x19   : > { %291 = vst.msk [vmem:[#allocation2 + $0xb0] sm:$0xff] %vm268_vm1, %v3616_v4  ;;  %292 = vst.msk [vmem:[#allocation2 + $0xb8] sm:$0xff] %vm268_vm1, %v3616_v4  ;;  %3367 = vmatmul.mubr.msk.bf16.vlgmr.msra.gmra.mxu0 %vm997_vm0, %v3530_v6  ;;  %3431 = vmatmul.mubr.msk.bf16.vlgmr.msra.gmra.mxu1 %vm997_vm0, %v3531_v7  ;;  %v3548_v24 = vld [vmem:[%s3669_s23 + $0x50] sm:$0xff]   ;;  %v3550_v26 = vld [vmem:[%s3669_s23 + $0x58] sm:$0xff]  }
  0x1a   : > { %293 = vst.msk [vmem:[#allocation2 + $0xc0] sm:$0xff] %vm268_vm1, %v3616_v4  ;;  %294 = vst.msk [vmem:[#allocation2 + $0xc8] sm:$0xff] %vm268_vm1, %v3616_v4  ;;  %3370 = vmatprep.mubr.msk.bf16.mxu0 %vm997_vm0, %v3532_v8  ;;  %3434 = vmatprep.mubr.msk.bf16.mxu1 %vm997_vm0, %v3533_v9  ;;  %v3549_v25 = vld [vmem:[%s3669_s23 + $0x150] sm:$0xff]   ;;  %v3551_v27 = vld [vmem:[%s3669_s23 + $0x158] sm:$0xff]  }
  0x1b   : > { %295 = vst.msk [vmem:[#allocation2 + $0xd0] sm:$0xff] %vm268_vm1, %v3616_v4  ;;  %296 = vst.msk [vmem:[#allocation2 + $0xd8] sm:$0xff] %vm268_vm1, %v3616_v4  ;;  %v3552_v28 = vld [vmem:[%s3669_s23 + $0x60] sm:$0xff]   ;;  %v3554_v30 = vld [vmem:[%s3669_s23 + $0x68] sm:$0xff]  }
  0x1c   : > { %297 = vst.msk [vmem:[#allocation2 + $0xe0] sm:$0xff] %vm268_vm1, %v3616_v4  ;;  %298 = vst.msk [vmem:[#allocation2 + $0xe8] sm:$0xff] %vm268_vm1, %v3616_v4  ;;  %v3553_v29 = vld [vmem:[%s3669_s23 + $0x160] sm:$0xff]   ;;  %v3555_v31 = vld [vmem:[%s3669_s23 + $0x168] sm:$0xff]  }
  0x1d   : > { %299 = vst.msk [vmem:[#allocation2 + $0xf0] sm:$0xff] %vm268_vm1, %v3616_v4  ;;  %300 = vst.msk [vmem:[#allocation2 + $0xf8] sm:$0xff] %vm268_vm1, %v3616_v4  ;;  %v3556_v32 = vld [vmem:[%s3669_s23 + $0x70] sm:$0xff]   ;;  %v3558_v34 = vld [vmem:[%s3669_s23 + $0x78] sm:$0xff]  }
  0x1e   : > { %301 = vst.msk [vmem:[#allocation2 + $0x100] sm:$0xff] %vm268_vm1, %v3616_v4  ;;  %302 = vst.msk [vmem:[#allocation2 + $0x108] sm:$0xff] %vm268_vm1, %v3616_v4  ;;  %v3557_v33 = vld [vmem:[%s3669_s23 + $0x170] sm:$0xff]   ;;  %v3559_v35 = vld [vmem:[%s3669_s23 + $0x178] sm:$0xff]  }
  0x1f   : > { %303 = vst.msk [vmem:[#allocation2 + $0x110] sm:$0xff] %vm268_vm1, %v3616_v4  ;;  %304 = vst.msk [vmem:[#allocation2 + $0x118] sm:$0xff] %vm268_vm1, %v3616_v4  ;;  %v3560_v36 = vld [vmem:[%s3669_s23 + $0x80] sm:$0xff]   ;;  %v3562_v38 = vld [vmem:[%s3669_s23 + $0x88] sm:$0xff]  }
  0x20   : > { %305 = vst.msk [vmem:[#allocation2 + $0x120] sm:$0xff] %vm268_vm1, %v3616_v4  ;;  %306 = vst.msk [vmem:[#allocation2 + $0x128] sm:$0xff] %vm268_vm1, %v3616_v4  ;;  %v3561_v37 = vld [vmem:[%s3669_s23 + $0x180] sm:$0xff]   ;;  %v3563_v39 = vld [vmem:[%s3669_s23 + $0x188] sm:$0xff]  }
  0x21   : > { %307 = vst.msk [vmem:[#allocation2 + $0x130] sm:$0xff] %vm268_vm1, %v3616_v4  ;;  %308 = vst.msk [vmem:[#allocation2 + $0x138] sm:$0xff] %vm268_vm1, %v3616_v4  ;;  %3371 = vmatmul.mubr.msk.bf16.gmra.mxu0 %vm997_vm0, %v3534_v10  ;;  %3435 = vmatmul.mubr.msk.bf16.gmra.mxu1 %vm997_vm0, %v3535_v11  ;;  %v3564_v40 = vld [vmem:[%s3669_s23 + $0x90] sm:$0xff]   ;;  %v3566_v42 = vld [vmem:[%s3669_s23 + $0x98] sm:$0xff]  }
  0x22   : > { %309 = vst.msk [vmem:[#allocation2 + $0x140] sm:$0xff] %vm268_vm1, %v3616_v4  ;;  %310 = vst.msk [vmem:[#allocation2 + $0x148] sm:$0xff] %vm268_vm1, %v3616_v4  ;;  %3374 = vmatprep.mubr.msk.bf16.mxu0 %vm997_vm0, %v3536_v12  ;;  %3438 = vmatprep.mubr.msk.bf16.mxu1 %vm997_vm0, %v3537_v13  ;;  %v3565_v41 = vld [vmem:[%s3669_s23 + $0x190] sm:$0xff]   ;;  %v3567_v43 = vld [vmem:[%s3669_s23 + $0x198] sm:$0xff]  }
  0x23   : > { %311 = vst.msk [vmem:[#allocation2 + $0x150] sm:$0xff] %vm268_vm1, %v3616_v4  ;;  %312 = vst.msk [vmem:[#allocation2 + $0x158] sm:$0xff] %vm268_vm1, %v3616_v4  ;;  %v3568_v44 = vld [vmem:[%s3669_s23 + $0xa0] sm:$0xff]   ;;  %v3570_v46 = vld [vmem:[%s3669_s23 + $0xa8] sm:$0xff]  }
  0x24   : > { %313 = vst.msk [vmem:[#allocation2 + $0x160] sm:$0xff] %vm268_vm1, %v3616_v4  ;;  %314 = vst.msk [vmem:[#allocation2 + $0x168] sm:$0xff] %vm268_vm1, %v3616_v4  ;;  %v3569_v45 = vld [vmem:[%s3669_s23 + $0x1a0] sm:$0xff]   ;;  %v3571_v47 = vld [vmem:[%s3669_s23 + $0x1a8] sm:$0xff]  }
  0x25   : > { %315 = vst.msk [vmem:[#allocation2 + $0x170] sm:$0xff] %vm268_vm1, %v3616_v4  ;;  %316 = vst.msk [vmem:[#allocation2 + $0x178] sm:$0xff] %vm268_vm1, %v3616_v4  ;;  %v3572_v48 = vld [vmem:[%s3669_s23 + $0xb0] sm:$0xff]   ;;  %v3574_v50 = vld [vmem:[%s3669_s23 + $0xb8] sm:$0xff]  }
  0x26   : > { %317 = vst.msk [vmem:[#allocation2 + $0x180] sm:$0xff] %vm268_vm1, %v3616_v4  ;;  %318 = vst.msk [vmem:[#allocation2 + $0x188] sm:$0xff] %vm268_vm1, %v3616_v4  ;;  %v3573_v49 = vld [vmem:[%s3669_s23 + $0x1b0] sm:$0xff]   ;;  %v3575_v51 = vld [vmem:[%s3669_s23 + $0x1b8] sm:$0xff]  }
  0x27   : > { %319 = vst.msk [vmem:[#allocation2 + $0x190] sm:$0xff] %vm268_vm1, %v3616_v4  ;;  %320 = vst.msk [vmem:[#allocation2 + $0x198] sm:$0xff] %vm268_vm1, %v3616_v4  ;;  %v3576_v52 = vld [vmem:[%s3669_s23 + $0xc0] sm:$0xff]   ;;  %v3578_v54 = vld [vmem:[%s3669_s23 + $0xc8] sm:$0xff]  }
  0x28   : > { %321 = vst.msk [vmem:[#allocation2 + $0x1a0] sm:$0xff] %vm268_vm1, %v3616_v4  ;;  %322 = vst.msk [vmem:[#allocation2 + $0x1a8] sm:$0xff] %vm268_vm1, %v3616_v4  ;;  %v3577_v53 = vld [vmem:[%s3669_s23 + $0x1c0] sm:$0xff]   ;;  %v3579_v55 = vld [vmem:[%s3669_s23 + $0x1c8] sm:$0xff]  }
  0x29   : > { %323 = vst.msk [vmem:[#allocation2 + $0x1b0] sm:$0xff] %vm268_vm1, %v3616_v4  ;;  %324 = vst.msk [vmem:[#allocation2 + $0x1b8] sm:$0xff] %vm268_vm1, %v3616_v4  ;;  %3375 = vmatmul.mubr.msk.bf16.gmra.mxu0 %vm997_vm0, %v3538_v14  ;;  %3439 = vmatmul.mubr.msk.bf16.gmra.mxu1 %vm997_vm0, %v3539_v15  ;;  %v3580_v56 = vld [vmem:[%s3669_s23 + $0xd0] sm:$0xff]   ;;  %v3582_v58 = vld [vmem:[%s3669_s23 + $0xd8] sm:$0xff]  }
  0x2a   : > { %325 = vst.msk [vmem:[#allocation2 + $0x1c0] sm:$0xff] %vm268_vm1, %v3616_v4  ;;  %326 = vst.msk [vmem:[#allocation2 + $0x1c8] sm:$0xff] %vm268_vm1, %v3616_v4  ;;  %3378 = vmatprep.mubr.msk.bf16.mxu0 %vm997_vm0, %v3540_v16  ;;  %3442 = vmatprep.mubr.msk.bf16.mxu1 %vm997_vm0, %v3541_v17  ;;  %v3581_v57 = vld [vmem:[%s3669_s23 + $0x1d0] sm:$0xff]   ;;  %v3583_v59 = vld [vmem:[%s3669_s23 + $0x1d8] sm:$0xff]  }
  0x2b   : > { %327 = vst.msk [vmem:[#allocation2 + $0x1d0] sm:$0xff] %vm268_vm1, %v3616_v4  ;;  %328 = vst.msk [vmem:[#allocation2 + $0x1d8] sm:$0xff] %vm268_vm1, %v3616_v4  ;;  %v3584_v60 = vld [vmem:[%s3669_s23 + $0xe0] sm:$0xff]   ;;  %v3586_v62 = vld [vmem:[%s3669_s23 + $0xe8] sm:$0xff]  }
  0x2c   : > { %329 = vst.msk [vmem:[#allocation2 + $0x1e0] sm:$0xff] %vm268_vm1, %v3616_v4  ;;  %330 = vst.msk [vmem:[#allocation2 + $0x1e8] sm:$0xff] %vm268_vm1, %v3616_v4  ;;  %v3585_v61 = vld [vmem:[%s3669_s23 + $0x1e0] sm:$0xff]   ;;  %v3587_v63 = vld [vmem:[%s3669_s23 + $0x1e8] sm:$0xff]  }
  0x2d   : > { %331 = vst.msk [vmem:[#allocation2 + $0x1f0] sm:$0xff] %vm268_vm1, %v3616_v4  ;;  %332 = vst.msk [vmem:[#allocation2 + $0x1f8] sm:$0xff] %vm268_vm1, %v3616_v4  ;;  %v3588_v0 = vld [vmem:[%s3669_s23 + $0xf0] sm:$0xff]   ;;  %v3590_v2 = vld [vmem:[%s3669_s23 + $0xf8] sm:$0xff]  }
  0x2e   : > { %333 = vst.msk [vmem:[#allocation2 + $0x200] sm:$0xff] %vm268_vm1, %v3616_v4  ;;  %334 = vst.msk [vmem:[#allocation2 + $0x208] sm:$0xff] %vm268_vm1, %v3616_v4  ;;  %v3589_v1 = vld [vmem:[%s3669_s23 + $0x1f0] sm:$0xff]   ;;  %v3591_v3 = vld [vmem:[%s3669_s23 + $0x1f8] sm:$0xff]  }
  0x2f   : > { %335 = vst.msk [vmem:[#allocation2 + $0x210] sm:$0xff] %vm268_vm1, %v3616_v4  ;;  %336 = vst.msk [vmem:[#allocation2 + $0x218] sm:$0xff] %vm268_vm1, %v3616_v4  ;;  %v525_v8 = vld [vmem:[#allocation2] sm:$0xff]  ;;  %v528_v14 = vld [vmem:[#allocation2 + $0x18] sm:$0xff] }
  0x30   : > { %337 = vst.msk [vmem:[#allocation2 + $0x220] sm:$0xff] %vm268_vm1, %v3616_v4  ;;  %338 = vst.msk [vmem:[#allocation2 + $0x228] sm:$0xff] %vm268_vm1, %v3616_v4 }
  0x31   : > { %339 = vst.msk [vmem:[#allocation2 + $0x230] sm:$0xff] %vm268_vm1, %v3616_v4  ;;  %340 = vst.msk [vmem:[#allocation2 + $0x238] sm:$0xff] %vm268_vm1, %v3616_v4  ;;  %3379 = vmatmul.mubr.msk.bf16.gmra.mxu0 %vm997_vm0, %v3542_v18  ;;  %3443 = vmatmul.mubr.msk.bf16.gmra.mxu1 %vm997_vm0, %v3543_v19 }
  0x32   : > { %341 = vst.msk [vmem:[#allocation2 + $0x240] sm:$0xff] %vm268_vm1, %v3616_v4  ;;  %342 = vst.msk [vmem:[#allocation2 + $0x248] sm:$0xff] %vm268_vm1, %v3616_v4  ;;  %3382 = vmatprep.mubr.msk.bf16.mxu0 %vm997_vm0, %v3544_v20  ;;  %3446 = vmatprep.mubr.msk.bf16.mxu1 %vm997_vm0, %v3545_v21  ;;  %v526_v20 = vld [vmem:[#allocation2 + $0x8] sm:$0xff] }
  0x33   : > { %343 = vst.msk [vmem:[#allocation2 + $0x250] sm:$0xff] %vm268_vm1, %v3616_v4  ;;  %344 = vst.msk [vmem:[#allocation2 + $0x258] sm:$0xff] %vm268_vm1, %v3616_v4 }
  0x34   : > { %345 = vst.msk [vmem:[#allocation2 + $0x260] sm:$0xff] %vm268_vm1, %v3616_v4  ;;  %346 = vst.msk [vmem:[#allocation2 + $0x268] sm:$0xff] %vm268_vm1, %v3616_v4 }
  0x35   : > { %347 = vst.msk [vmem:[#allocation2 + $0x270] sm:$0xff] %vm268_vm1, %v3616_v4  ;;  %348 = vst.msk [vmem:[#allocation2 + $0x278] sm:$0xff] %vm268_vm1, %v3616_v4  ;;  %v589_v9 = vld [vmem:[#allocation2 + $0x200] sm:$0xff]  ;;  %v590_v21 = vld [vmem:[#allocation2 + $0x208] sm:$0xff] }
  0x36   : > { %349 = vst.msk [vmem:[#allocation2 + $0x280] sm:$0xff] %vm268_vm1, %v3616_v4  ;;  %350 = vst.msk [vmem:[#allocation2 + $0x288] sm:$0xff] %vm268_vm1, %v3616_v4  ;;  %v591_v5 = vld [vmem:[#allocation2 + $0x210] sm:$0xff]  ;;  %v592_v15 = vld [vmem:[#allocation2 + $0x218] sm:$0xff] }
  0x37   : > { %351 = vst.msk [vmem:[#allocation2 + $0x290] sm:$0xff] %vm268_vm1, %v3616_v4  ;;  %352 = vst.msk [vmem:[#allocation2 + $0x298] sm:$0xff] %vm268_vm1, %v3616_v4 }
  0x38   : > { %353 = vst.msk [vmem:[#allocation2 + $0x2a0] sm:$0xff] %vm268_vm1, %v3616_v4  ;;  %354 = vst.msk [vmem:[#allocation2 + $0x2a8] sm:$0xff] %vm268_vm1, %v3616_v4 }
  0x39   : > { %355 = vst.msk [vmem:[#allocation2 + $0x2b0] sm:$0xff] %vm268_vm1, %v3616_v4  ;;  %356 = vst.msk [vmem:[#allocation2 + $0x2b8] sm:$0xff] %vm268_vm1, %v3616_v4  ;;  %3383 = vmatmul.mubr.msk.bf16.gmra.mxu0 %vm997_vm0, %v3546_v22  ;;  %3447 = vmatmul.mubr.msk.bf16.gmra.mxu1 %vm997_vm0, %v3547_v23 }
  0x3a   : > { %357 = vst.msk [vmem:[#allocation2 + $0x2c0] sm:$0xff] %vm268_vm1, %v3616_v4  ;;  %358 = vst.msk [vmem:[#allocation2 + $0x2c8] sm:$0xff] %vm268_vm1, %v3616_v4  ;;  %3386 = vmatprep.mubr.msk.bf16.mxu0 %vm997_vm0, %v3548_v24  ;;  %3450 = vmatprep.mubr.msk.bf16.mxu1 %vm997_vm0, %v3549_v25 }
  0x3b   : > { %359 = vst.msk [vmem:[#allocation2 + $0x2d0] sm:$0xff] %vm268_vm1, %v3616_v4  ;;  %360 = vst.msk [vmem:[#allocation2 + $0x2d8] sm:$0xff] %vm268_vm1, %v3616_v4 }
  0x3c   : > { %361 = vst.msk [vmem:[#allocation2 + $0x2e0] sm:$0xff] %vm268_vm1, %v3616_v4  ;;  %362 = vst.msk [vmem:[#allocation2 + $0x2e8] sm:$0xff] %vm268_vm1, %v3616_v4 }
  0x3d   : > { %363 = vst.msk [vmem:[#allocation2 + $0x2f0] sm:$0xff] %vm268_vm1, %v3616_v4  ;;  %364 = vst.msk [vmem:[#allocation2 + $0x2f8] sm:$0xff] %vm268_vm1, %v3616_v4 }
  0x3e   : > { %365 = vst.msk [vmem:[#allocation2 + $0x300] sm:$0xff] %vm268_vm1, %v3616_v4  ;;  %366 = vst.msk [vmem:[#allocation2 + $0x308] sm:$0xff] %vm268_vm1, %v3616_v4 }
  0x3f   : > { %367 = vst.msk [vmem:[#allocation2 + $0x310] sm:$0xff] %vm268_vm1, %v3616_v4  ;;  %368 = vst.msk [vmem:[#allocation2 + $0x318] sm:$0xff] %vm268_vm1, %v3616_v4 }
  0x40   : > { %369 = vst.msk [vmem:[#allocation2 + $0x320] sm:$0xff] %vm268_vm1, %v3616_v4  ;;  %370 = vst.msk [vmem:[#allocation2 + $0x328] sm:$0xff] %vm268_vm1, %v3616_v4 }
  0x41   : > { %371 = vst.msk [vmem:[#allocation2 + $0x330] sm:$0xff] %vm268_vm1, %v3616_v4  ;;  %372 = vst.msk [vmem:[#allocation2 + $0x338] sm:$0xff] %vm268_vm1, %v3616_v4  ;;  %3387 = vmatmul.mubr.msk.bf16.gmra.mxu0 %vm997_vm0, %v3550_v26  ;;  %3451 = vmatmul.mubr.msk.bf16.gmra.mxu1 %vm997_vm0, %v3551_v27  ;;  %v531_v26 = vld [vmem:[#allocation2 + $0x30] sm:$0xff] }
  0x42   : > { %373 = vst.msk [vmem:[#allocation2 + $0x340] sm:$0xff] %vm268_vm1, %v3616_v4  ;;  %374 = vst.msk [vmem:[#allocation2 + $0x348] sm:$0xff] %vm268_vm1, %v3616_v4  ;;  %3390 = vmatprep.mubr.msk.bf16.mxu0 %vm997_vm0, %v3552_v28  ;;  %3454 = vmatprep.mubr.msk.bf16.mxu1 %vm997_vm0, %v3553_v29  ;;  %v595_v27 = vld [vmem:[#allocation2 + $0x230] sm:$0xff] }
  0x43   : > { %375 = vst.msk [vmem:[#allocation2 + $0x350] sm:$0xff] %vm268_vm1, %v3616_v4  ;;  %376 = vst.msk [vmem:[#allocation2 + $0x358] sm:$0xff] %vm268_vm1, %v3616_v4 }
  0x44   : > { %377 = vst.msk [vmem:[#allocation2 + $0x360] sm:$0xff] %vm268_vm1, %v3616_v4  ;;  %378 = vst.msk [vmem:[#allocation2 + $0x368] sm:$0xff] %vm268_vm1, %v3616_v4 }
  0x45   : > { %379 = vst.msk [vmem:[#allocation2 + $0x370] sm:$0xff] %vm268_vm1, %v3616_v4  ;;  %380 = vst.msk [vmem:[#allocation2 + $0x378] sm:$0xff] %vm268_vm1, %v3616_v4 }
  0x46   : > { %381 = vst.msk [vmem:[#allocation2 + $0x380] sm:$0xff] %vm268_vm1, %v3616_v4  ;;  %382 = vst.msk [vmem:[#allocation2 + $0x388] sm:$0xff] %vm268_vm1, %v3616_v4 }
  0x47   : > { %383 = vst.msk [vmem:[#allocation2 + $0x390] sm:$0xff] %vm268_vm1, %v3616_v4  ;;  %384 = vst.msk [vmem:[#allocation2 + $0x398] sm:$0xff] %vm268_vm1, %v3616_v4 }
  0x48   : > { %385 = vst.msk [vmem:[#allocation2 + $0x3a0] sm:$0xff] %vm268_vm1, %v3616_v4  ;;  %386 = vst.msk [vmem:[#allocation2 + $0x3a8] sm:$0xff] %vm268_vm1, %v3616_v4 }
  0x49   : > { %387 = vst.msk [vmem:[#allocation2 + $0x3b0] sm:$0xff] %vm268_vm1, %v3616_v4  ;;  %388 = vst.msk [vmem:[#allocation2 + $0x3b8] sm:$0xff] %vm268_vm1, %v3616_v4  ;;  %3391 = vmatmul.mubr.msk.bf16.gmra.mxu0 %vm997_vm0, %v3554_v30  ;;  %3455 = vmatmul.mubr.msk.bf16.gmra.mxu1 %vm997_vm0, %v3555_v31 }
  0x4a   : > { %389 = vst.msk [vmem:[#allocation2 + $0x3c0] sm:$0xff] %vm268_vm1, %v3616_v4  ;;  %390 = vst.msk [vmem:[#allocation2 + $0x3c8] sm:$0xff] %vm268_vm1, %v3616_v4  ;;  %3394 = vmatprep.mubr.msk.bf16.mxu0 %vm997_vm0, %v3556_v32  ;;  %3458 = vmatprep.mubr.msk.bf16.mxu1 %vm997_vm0, %v3557_v33  ;;  %v529_v32 = vld [vmem:[#allocation2 + $0x20] sm:$0xff] }
  0x4b   : > { %391 = vst.msk [vmem:[#allocation2 + $0x3d0] sm:$0xff] %vm268_vm1, %v3616_v4  ;;  %392 = vst.msk [vmem:[#allocation2 + $0x3d8] sm:$0xff] %vm268_vm1, %v3616_v4  ;;  %v593_v33 = vld [vmem:[#allocation2 + $0x220] sm:$0xff] }
  0x4c   : > { %393 = vst.msk [vmem:[#allocation2 + $0x3e0] sm:$0xff] %vm268_vm1, %v3616_v4  ;;  %394 = vst.msk [vmem:[#allocation2 + $0x3e8] sm:$0xff] %vm268_vm1, %v3616_v4 }
  0x4d   : > { %395 = vst.msk [vmem:[#allocation2 + $0x3f0] sm:$0xff] %vm268_vm1, %v3616_v4  ;;  %396 = vst.msk [vmem:[#allocation2 + $0x3f8] sm:$0xff] %vm268_vm1, %v3616_v4  ;;  %v527_v4 = vld [vmem:[#allocation2 + $0x10] sm:$0xff] }
  0x51   : > { %3395 = vmatmul.mubr.msk.bf16.gmra.mxu0 %vm997_vm0, %v3558_v34  ;;  %3459 = vmatmul.mubr.msk.bf16.gmra.mxu1 %vm997_vm0, %v3559_v35 }
  0x52   : > { %3398 = vmatprep.mubr.msk.bf16.mxu0 %vm997_vm0, %v3560_v36  ;;  %3462 = vmatprep.mubr.msk.bf16.mxu1 %vm997_vm0, %v3561_v37  ;;  %v532_v36 = vld [vmem:[#allocation2 + $0x38] sm:$0xff] }
  0x59   : > { %3399 = vmatmul.mubr.msk.bf16.gmra.mxu0 %vm997_vm0, %v3562_v38  ;;  %3463 = vmatmul.mubr.msk.bf16.gmra.mxu1 %vm997_vm0, %v3563_v39 }
  0x5a   : > { %3402 = vmatprep.mubr.msk.bf16.mxu0 %vm997_vm0, %v3564_v40  ;;  %3466 = vmatprep.mubr.msk.bf16.mxu1 %vm997_vm0, %v3565_v41  ;;  %v596_v41 = vld [vmem:[#allocation2 + $0x238] sm:$0xff] }
  0x61   : > { %3403 = vmatmul.mubr.msk.bf16.gmra.mxu0 %vm997_vm0, %v3566_v42  ;;  %3467 = vmatmul.mubr.msk.bf16.gmra.mxu1 %vm997_vm0, %v3567_v43 }
  0x62   : > { %3406 = vmatprep.mubr.msk.bf16.mxu0 %vm997_vm0, %v3568_v44  ;;  %3470 = vmatprep.mubr.msk.bf16.mxu1 %vm997_vm0, %v3569_v45 }
  0x69   : > { %3407 = vmatmul.mubr.msk.bf16.gmra.mxu0 %vm997_vm0, %v3570_v46  ;;  %3471 = vmatmul.mubr.msk.bf16.gmra.mxu1 %vm997_vm0, %v3571_v47  ;;  %v530_v46 = vld [vmem:[#allocation2 + $0x28] sm:$0xff] }
  0x6a   : > { %3410 = vmatprep.mubr.msk.bf16.mxu0 %vm997_vm0, %v3572_v48  ;;  %3474 = vmatprep.mubr.msk.bf16.mxu1 %vm997_vm0, %v3573_v49 }
  0x71   : > { %3411 = vmatmul.mubr.msk.bf16.gmra.mxu0 %vm997_vm0, %v3574_v50  ;;  %3475 = vmatmul.mubr.msk.bf16.gmra.mxu1 %vm997_vm0, %v3575_v51  ;;  %v594_v51 = vld [vmem:[#allocation2 + $0x228] sm:$0xff] }
  0x72   : > { %3414 = vmatprep.mubr.msk.bf16.mxu0 %vm997_vm0, %v3576_v52  ;;  %3478 = vmatprep.mubr.msk.bf16.mxu1 %vm997_vm0, %v3577_v53 }
  0x79   : > { %3415 = vmatmul.mubr.msk.bf16.gmra.mxu0 %vm997_vm0, %v3578_v54  ;;  %3479 = vmatmul.mubr.msk.bf16.gmra.mxu1 %vm997_vm0, %v3579_v55 }
  0x7a   : > { %3418 = vmatprep.mubr.msk.bf16.mxu0 %vm997_vm0, %v3580_v56  ;;  %3482 = vmatprep.mubr.msk.bf16.mxu1 %vm997_vm0, %v3581_v57  ;;  %v535_v56 = vld [vmem:[#allocation2 + $0x50] sm:$0xff] }
  0x81   : > { %3419 = vmatmul.mubr.msk.bf16.gmra.mxu0 %vm997_vm0, %v3582_v58  ;;  %3483 = vmatmul.mubr.msk.bf16.gmra.mxu1 %vm997_vm0, %v3583_v59 }
  0x82   : > { %3422 = vmatprep.mubr.msk.bf16.mxu0 %vm997_vm0, %v3584_v60  ;;  %3486 = vmatprep.mubr.msk.bf16.mxu1 %vm997_vm0, %v3585_v61  ;;  %v599_v61 = vld [vmem:[#allocation2 + $0x250] sm:$0xff] }
  0x89   : > { %3423 = vmatmul.mubr.msk.bf16.gmra.mxu0 %vm997_vm0, %v3586_v62  ;;  %3487 = vmatmul.mubr.msk.bf16.gmra.mxu1 %vm997_vm0, %v3587_v63 }
  0x8a   : > { %3426 = vmatprep.mubr.msk.bf16.mxu0 %vm997_vm0, %v3588_v0  ;;  %3490 = vmatprep.mubr.msk.bf16.mxu1 %vm997_vm0, %v3589_v1 }
  0x91   : > { %3427 = vmatmul.mubr.msk.bf16.gmra.mxu0 %vm997_vm0, %v3590_v2  ;;  %3491 = vmatmul.mubr.msk.bf16.gmra.mxu1 %vm997_vm0, %v3591_v3  ;;  %v533_v2 = vld [vmem:[#allocation2 + $0x40] sm:$0xff] }
  0xd9   : > { %v3368_v6 = vpop.f32.mrf.mxu0  ;;  %v3432_v7 = vpop.f32.mrf.mxu1 }
  0xda   : > { %v1737_v10 = vadd.f32 %v3368_v6, %v527_v4  ;;  %v1801_v11 = vadd.f32 %v3432_v7, %v591_v5  ;;  %v597_v7 = vld [vmem:[#allocation2 + $0x240] sm:$0xff] }
  0xdb   : > { %v1224_v12 = vpop.f32.mrf.mxu0  ;;  %v1480_v13 = vpop.f32.mrf.mxu1 }
  0xdc   : > { %1866 = vst.msk [vmem:[#allocation2 + $0x10] sm:$0xff] %vm268_vm1, %v1737_v10  ;;  %1930 = vst.msk [vmem:[#allocation2 + $0x210] sm:$0xff] %vm268_vm1, %v1801_v11  ;;  %v1735_v16 = vadd.f32 %v1224_v12, %v525_v8  ;;  %v1799_v17 = vadd.f32 %v1480_v13, %v589_v9  ;;  %v536_v12 = vld [vmem:[#allocation2 + $0x58] sm:$0xff] }
  0xdd   : > { %v3369_v18 = vpop.f32.mrf.mxu0  ;;  %v3433_v19 = vpop.f32.mrf.mxu1 }
  0xde   : > { %1864 = vst.msk [vmem:[#allocation2] sm:$0xff] %vm268_vm1, %v1735_v16  ;;  %1928 = vst.msk [vmem:[#allocation2 + $0x200] sm:$0xff] %vm268_vm1, %v1799_v17  ;;  %v1738_v22 = vadd.f32 %v3369_v18, %v528_v14  ;;  %v1802_v23 = vadd.f32 %v3433_v19, %v592_v15  ;;  %v600_v17 = vld [vmem:[#allocation2 + $0x258] sm:$0xff] }
  0xdf   : > { %v1227_v24 = vpop.f32.mrf.mxu0  ;;  %v1483_v25 = vpop.f32.mrf.mxu1 }
  0xe0   : > { %1867 = vst.msk [vmem:[#allocation2 + $0x18] sm:$0xff] %vm268_vm1, %v1738_v22  ;;  %1931 = vst.msk [vmem:[#allocation2 + $0x218] sm:$0xff] %vm268_vm1, %v1802_v23  ;;  %v1736_v28 = vadd.f32 %v1227_v24, %v526_v20  ;;  %v1800_v29 = vadd.f32 %v1483_v25, %v590_v21  ;;  %v534_v22 = vld [vmem:[#allocation2 + $0x48] sm:$0xff] }
  0xe1   : > { %v3372_v30 = vpop.f32.mrf.mxu0  ;;  %v3436_v31 = vpop.f32.mrf.mxu1 }
  0xe2   : > { %1865 = vst.msk [vmem:[#allocation2 + $0x8] sm:$0xff] %vm268_vm1, %v1736_v28  ;;  %1929 = vst.msk [vmem:[#allocation2 + $0x208] sm:$0xff] %vm268_vm1, %v1800_v29  ;;  %v1741_v34 = vadd.f32 %v3372_v30, %v531_v26  ;;  %v1805_v35 = vadd.f32 %v3436_v31, %v595_v27  ;;  %v598_v27 = vld [vmem:[#allocation2 + $0x248] sm:$0xff] }
  0xe3   : > { %v1997_v37 = vld [vmem:[#allocation2 + $0x10] sm:$0xff]  ;;  %v1240_v39 = vpop.f32.mrf.mxu0  ;;  %v1496_v40 = vpop.f32.mrf.mxu1 }
  0xe4   : > { %v2061_v38 = vld [vmem:[#allocation2 + $0x210] sm:$0xff]  ;;  %v3167_v42 = vpack.c.bf16 %v1997_v37, %v1997_v37  ;;  %1870 = vst.msk [vmem:[#allocation2 + $0x30] sm:$0xff] %vm268_vm1, %v1741_v34  ;;  %1934 = vst.msk [vmem:[#allocation2 + $0x230] sm:$0xff] %vm268_vm1, %v1805_v35  ;;  %v1739_v44 = vadd.f32 %v1240_v39, %v529_v32  ;;  %v1803_v45 = vadd.f32 %v1496_v40, %v593_v33 }
  0xe5   : > { %v3231_v43 = vpack.c.bf16 %v2061_v38, %v2061_v38  ;;  %v1995_v47 = vld [vmem:[#allocation2] sm:$0xff]  ;;  %v3373_v49 = vpop.f32.mrf.mxu0  ;;  %v3437_v50 = vpop.f32.mrf.mxu1  ;;  %v539_v32 = vld [vmem:[#allocation2 + $0x70] sm:$0xff] }
  0xe6   : > { %v2059_v48 = vld [vmem:[#allocation2 + $0x200] sm:$0xff]  ;;  %2638 = vst.msk [vmem:[%s4075_s26 + $0x8] sm:$0xf] %vm2635_vm2, %v3167_v42  ;;  %v3165_v52 = vpack.c.bf16 %v1995_v47, %v1995_v47  ;;  %v1742_v54 = vadd.f32 %v3373_v49, %v532_v36  ;;  %v1806_v55 = vadd.f32 %v3437_v50, %v596_v41  ;;  %v603_v37 = vld [vmem:[#allocation2 + $0x270] sm:$0xff] }
  0xe7   : > { %2702 = vst.msk [vmem:[%s4075_s26 + $0x108] sm:$0xf] %vm2635_vm2, %v3231_v43  ;;  %v3229_v53 = vpack.c.bf16 %v2059_v48, %v2059_v48  ;;  %v1998_v57 = vld [vmem:[#allocation2 + $0x18] sm:$0xff]  ;;  %v1243_v59 = vpop.f32.mrf.mxu0  ;;  %v1499_v60 = vpop.f32.mrf.mxu1  ;;  %v537_v42 = vld [vmem:[#allocation2 + $0x60] sm:$0xff] }
  0xe8   : > { %1868 = vst.msk [vmem:[#allocation2 + $0x20] sm:$0xff] %vm268_vm1, %v1739_v44  ;;  %1932 = vst.msk [vmem:[#allocation2 + $0x220] sm:$0xff] %vm268_vm1, %v1803_v45  ;;  %v2062_v58 = vld [vmem:[#allocation2 + $0x218] sm:$0xff]  ;;  %v3168_v62 = vpack.c.bf16 %v1998_v57, %v1998_v57  ;;  %v1740_v0 = vadd.f32 %v1243_v59, %v530_v46  ;;  %v1804_v1 = vadd.f32 %v1499_v60, %v594_v51  ;;  %v601_v47 = vld [vmem:[#allocation2 + $0x260] sm:$0xff] }
  0xe9   : > { %2636 = vst.msk [vmem:[%s4075_s26] sm:$0xf] %vm2635_vm2, %v3165_v52  ;;  %2700 = vst.msk [vmem:[%s4075_s26 + $0x100] sm:$0xf] %vm2635_vm2, %v3229_v53  ;;  %v3232_v63 = vpack.c.bf16 %v2062_v58, %v2062_v58  ;;  %v1996_v3 = vld [vmem:[#allocation2 + $0x8] sm:$0xff]  ;;  %v3376_v5 = vpop.f32.mrf.mxu0  ;;  %v3440_v6 = vpop.f32.mrf.mxu1  ;;  %v540_v52 = vld [vmem:[#allocation2 + $0x78] sm:$0xff] }
  0xea   : > { %1871 = vst.msk [vmem:[#allocation2 + $0x38] sm:$0xff] %vm268_vm1, %v1742_v54  ;;  %1935 = vst.msk [vmem:[#allocation2 + $0x238] sm:$0xff] %vm268_vm1, %v1806_v55  ;;  %v2060_v4 = vld [vmem:[#allocation2 + $0x208] sm:$0xff]  ;;  %v3166_v8 = vpack.c.bf16 %v1996_v3, %v1996_v3  ;;  %v1745_v10 = vadd.f32 %v3376_v5, %v535_v56  ;;  %v1809_v11 = vadd.f32 %v3440_v6, %v599_v61  ;;  %v604_v57 = vld [vmem:[#allocation2 + $0x278] sm:$0xff] }
  0xeb   : > { %2639 = vst.msk [vmem:[%s4075_s26 + $0xc] sm:$0xf] %vm2635_vm2, %v3168_v62  ;;  %2703 = vst.msk [vmem:[%s4075_s26 + $0x10c] sm:$0xf] %vm2635_vm2, %v3232_v63  ;;  %v3230_v9 = vpack.c.bf16 %v2060_v4, %v2060_v4  ;;  %v2001_v13 = vld [vmem:[#allocation2 + $0x30] sm:$0xff]  ;;  %v1256_v15 = vpop.f32.mrf.mxu0  ;;  %v1512_v16 = vpop.f32.mrf.mxu1  ;;  %v538_v62 = vld [vmem:[#allocation2 + $0x68] sm:$0xff] }
  0xec   : > { %1869 = vst.msk [vmem:[#allocation2 + $0x28] sm:$0xff] %vm268_vm1, %v1740_v0  ;;  %1933 = vst.msk [vmem:[#allocation2 + $0x228] sm:$0xff] %vm268_vm1, %v1804_v1  ;;  %v2065_v14 = vld [vmem:[#allocation2 + $0x230] sm:$0xff]  ;;  %v3171_v18 = vpack.c.bf16 %v2001_v13, %v2001_v13  ;;  %v1743_v20 = vadd.f32 %v1256_v15, %v533_v2  ;;  %v1807_v21 = vadd.f32 %v1512_v16, %v597_v7  ;;  %v602_v3 = vld [vmem:[#allocation2 + $0x268] sm:$0xff] }
  0xed   : > { %2637 = vst.msk [vmem:[%s4075_s26 + $0x4] sm:$0xf] %vm2635_vm2, %v3166_v8  ;;  %2701 = vst.msk [vmem:[%s4075_s26 + $0x104] sm:$0xf] %vm2635_vm2, %v3230_v9  ;;  %v3235_v19 = vpack.c.bf16 %v2065_v14, %v2065_v14  ;;  %v3377_v25 = vpop.f32.mrf.mxu0  ;;  %v3441_v26 = vpop.f32.mrf.mxu1  ;;  %v543_v8 = vld [vmem:[#allocation2 + $0x90] sm:$0xff] }
  0xee   : > { %1874 = vst.msk [vmem:[#allocation2 + $0x50] sm:$0xff] %vm268_vm1, %v1745_v10  ;;  %1938 = vst.msk [vmem:[#allocation2 + $0x250] sm:$0xff] %vm268_vm1, %v1809_v11  ;;  %v1746_v30 = vadd.f32 %v3377_v25, %v536_v12  ;;  %v1810_v31 = vadd.f32 %v3441_v26, %v600_v17  ;;  %v607_v13 = vld [vmem:[#allocation2 + $0x290] sm:$0xff] }
  0xef   : > { %v1999_v23 = vld [vmem:[#allocation2 + $0x20] sm:$0xff]  ;;  %2642 = vst.msk [vmem:[%s4075_s26 + $0x18] sm:$0xf] %vm2635_vm2, %v3171_v18  ;;  %2706 = vst.msk [vmem:[%s4075_s26 + $0x118] sm:$0xf] %vm2635_vm2, %v3235_v19  ;;  %v1259_v35 = vpop.f32.mrf.mxu0  ;;  %v1515_v36 = vpop.f32.mrf.mxu1 }
  0xf0   : > { %v2063_v24 = vld [vmem:[#allocation2 + $0x220] sm:$0xff]  ;;  %v3169_v28 = vpack.c.bf16 %v1999_v23, %v1999_v23  ;;  %1872 = vst.msk [vmem:[#allocation2 + $0x40] sm:$0xff] %vm268_vm1, %v1743_v20  ;;  %1936 = vst.msk [vmem:[#allocation2 + $0x240] sm:$0xff] %vm268_vm1, %v1807_v21  ;;  %v1744_v40 = vadd.f32 %v1259_v35, %v534_v22  ;;  %v1808_v41 = vadd.f32 %v1515_v36, %v598_v27 }
  0xf1   : > { %v3233_v29 = vpack.c.bf16 %v2063_v24, %v2063_v24  ;;  %v2002_v33 = vld [vmem:[#allocation2 + $0x38] sm:$0xff]  ;;  %1875 = vst.msk [vmem:[#allocation2 + $0x58] sm:$0xff] %vm268_vm1, %v1746_v30  ;;  %1939 = vst.msk [vmem:[#allocation2 + $0x258] sm:$0xff] %vm268_vm1, %v1810_v31  ;;  %v3380_v45 = vpop.f32.mrf.mxu0  ;;  %v3444_v46 = vpop.f32.mrf.mxu1  ;;  %v541_v18 = vld [vmem:[#allocation2 + $0x80] sm:$0xff] }
  0xf2   : > { %v2066_v34 = vld [vmem:[#allocation2 + $0x238] sm:$0xff]  ;;  %2640 = vst.msk [vmem:[%s4075_s26 + $0x10] sm:$0xf] %vm2635_vm2, %v3169_v28  ;;  %v3172_v38 = vpack.c.bf16 %v2002_v33, %v2002_v33  ;;  %v1749_v50 = vadd.f32 %v3380_v45, %v539_v32  ;;  %v1813_v51 = vadd.f32 %v3444_v46, %v603_v37  ;;  %v605_v23 = vld [vmem:[#allocation2 + $0x280] sm:$0xff] }
  0xf3   : > { %2704 = vst.msk [vmem:[%s4075_s26 + $0x110] sm:$0xf] %vm2635_vm2, %v3233_v29  ;;  %v3236_v39 = vpack.c.bf16 %v2066_v34, %v2066_v34  ;;  %v2000_v43 = vld [vmem:[#allocation2 + $0x28] sm:$0xff]  ;;  %v1272_v55 = vpop.f32.mrf.mxu0  ;;  %v1528_v56 = vpop.f32.mrf.mxu1  ;;  %v544_v28 = vld [vmem:[#allocation2 + $0x98] sm:$0xff] }
  0xf4   : > { %v2064_v44 = vld [vmem:[#allocation2 + $0x228] sm:$0xff]  ;;  %2643 = vst.msk [vmem:[%s4075_s26 + $0x1c] sm:$0xf] %vm2635_vm2, %v3172_v38  ;;  %v3170_v48 = vpack.c.bf16 %v2000_v43, %v2000_v43  ;;  %v1747_v60 = vadd.f32 %v1272_v55, %v537_v42  ;;  %v1811_v61 = vadd.f32 %v1528_v56, %v601_v47  ;;  %v608_v33 = vld [vmem:[#allocation2 + $0x298] sm:$0xff] }
  0xf5   : > { %2707 = vst.msk [vmem:[%s4075_s26 + $0x11c] sm:$0xf] %vm2635_vm2, %v3236_v39  ;;  %v3234_v49 = vpack.c.bf16 %v2064_v44, %v2064_v44  ;;  %v2005_v53 = vld [vmem:[#allocation2 + $0x50] sm:$0xff]  ;;  %v3381_v1 = vpop.f32.mrf.mxu0  ;;  %v3445_v2 = vpop.f32.mrf.mxu1  ;;  %v542_v38 = vld [vmem:[#allocation2 + $0x88] sm:$0xff] }
  0xf6   : > { %1873 = vst.msk [vmem:[#allocation2 + $0x48] sm:$0xff] %vm268_vm1, %v1744_v40  ;;  %1937 = vst.msk [vmem:[#allocation2 + $0x248] sm:$0xff] %vm268_vm1, %v1808_v41  ;;  %v2069_v54 = vld [vmem:[#allocation2 + $0x250] sm:$0xff]  ;;  %v3175_v58 = vpack.c.bf16 %v2005_v53, %v2005_v53  ;;  %v1750_v6 = vadd.f32 %v3381_v1, %v540_v52  ;;  %v1814_v7 = vadd.f32 %v3445_v2, %v604_v57  ;;  %v606_v43 = vld [vmem:[#allocation2 + $0x288] sm:$0xff] }
  0xf7   : > { %2641 = vst.msk [vmem:[%s4075_s26 + $0x14] sm:$0xf] %vm2635_vm2, %v3170_v48  ;;  %2705 = vst.msk [vmem:[%s4075_s26 + $0x114] sm:$0xf] %vm2635_vm2, %v3234_v49  ;;  %v3239_v59 = vpack.c.bf16 %v2069_v54, %v2069_v54  ;;  %v2003_v63 = vld [vmem:[#allocation2 + $0x40] sm:$0xff]  ;;  %v1275_v11 = vpop.f32.mrf.mxu0  ;;  %v1531_v12 = vpop.f32.mrf.mxu1  ;;  %v547_v48 = vld [vmem:[#allocation2 + $0xb0] sm:$0xff] }
  0xf8   : > { %1878 = vst.msk [vmem:[#allocation2 + $0x70] sm:$0xff] %vm268_vm1, %v1749_v50  ;;  %1942 = vst.msk [vmem:[#allocation2 + $0x270] sm:$0xff] %vm268_vm1, %v1813_v51  ;;  %v2067_v0 = vld [vmem:[#allocation2 + $0x240] sm:$0xff]  ;;  %v3173_v4 = vpack.c.bf16 %v2003_v63, %v2003_v63  ;;  %v2006_v9 = vld [vmem:[#allocation2 + $0x58] sm:$0xff]  ;;  %v1748_v16 = vadd.f32 %v1275_v11, %v538_v62  ;;  %v1812_v17 = vadd.f32 %v1531_v12, %v602_v3 }
  0xf9   : > { %2646 = vst.msk [vmem:[%s4075_s26 + $0x28] sm:$0xf] %vm2635_vm2, %v3175_v58  ;;  %2710 = vst.msk [vmem:[%s4075_s26 + $0x128] sm:$0xf] %vm2635_vm2, %v3239_v59  ;;  %v3237_v5 = vpack.c.bf16 %v2067_v0, %v2067_v0  ;;  %v2070_v10 = vld [vmem:[#allocation2 + $0x258] sm:$0xff]  ;;  %v3176_v14 = vpack.c.bf16 %v2006_v9, %v2006_v9  ;;  %v3384_v21 = vpop.f32.mrf.mxu0  ;;  %v3448_v22 = vpop.f32.mrf.mxu1  ;;  %v611_v53 = vld [vmem:[#allocation2 + $0x2b0] sm:$0xff] }
  0xfa   : > { %1876 = vst.msk [vmem:[#allocation2 + $0x60] sm:$0xff] %vm268_vm1, %v1747_v60  ;;  %1940 = vst.msk [vmem:[#allocation2 + $0x260] sm:$0xff] %vm268_vm1, %v1811_v61  ;;  %v3240_v15 = vpack.c.bf16 %v2070_v10, %v2070_v10  ;;  %v1753_v26 = vadd.f32 %v3384_v21, %v543_v8  ;;  %v1817_v27 = vadd.f32 %v3448_v22, %v607_v13  ;;  %v545_v58 = vld [vmem:[#allocation2 + $0xa0] sm:$0xff]  ;;  %v612_v9 = vld [vmem:[#allocation2 + $0x2b8] sm:$0xff] }
  0xfb   : > { %2644 = vst.msk [vmem:[%s4075_s26 + $0x20] sm:$0xf] %vm2635_vm2, %v3173_v4  ;;  %2708 = vst.msk [vmem:[%s4075_s26 + $0x120] sm:$0xf] %vm2635_vm2, %v3237_v5  ;;  %v1288_v31 = vpop.f32.mrf.mxu0  ;;  %v1544_v32 = vpop.f32.mrf.mxu1  ;;  %v609_v63 = vld [vmem:[#allocation2 + $0x2a0] sm:$0xff]  ;;  %v548_v4 = vld [vmem:[#allocation2 + $0xb8] sm:$0xff] }
  0xfc   : > { %1879 = vst.msk [vmem:[#allocation2 + $0x78] sm:$0xff] %vm268_vm1, %v1750_v6  ;;  %1943 = vst.msk [vmem:[#allocation2 + $0x278] sm:$0xff] %vm268_vm1, %v1814_v7  ;;  %v1751_v36 = vadd.f32 %v1288_v31, %v541_v18  ;;  %v1815_v37 = vadd.f32 %v1544_v32, %v605_v23 }
  0xfd   : > { %v2004_v19 = vld [vmem:[#allocation2 + $0x48] sm:$0xff]  ;;  %2647 = vst.msk [vmem:[%s4075_s26 + $0x2c] sm:$0xf] %vm2635_vm2, %v3176_v14  ;;  %2711 = vst.msk [vmem:[%s4075_s26 + $0x12c] sm:$0xf] %vm2635_vm2, %v3240_v15  ;;  %v3385_v41 = vpop.f32.mrf.mxu0  ;;  %v3449_v42 = vpop.f32.mrf.mxu1 }
  0xfe   : > { %v2068_v20 = vld [vmem:[#allocation2 + $0x248] sm:$0xff]  ;;  %v3174_v24 = vpack.c.bf16 %v2004_v19, %v2004_v19  ;;  %1877 = vst.msk [vmem:[#allocation2 + $0x68] sm:$0xff] %vm268_vm1, %v1748_v16  ;;  %1941 = vst.msk [vmem:[#allocation2 + $0x268] sm:$0xff] %vm268_vm1, %v1812_v17  ;;  %v1754_v46 = vadd.f32 %v3385_v41, %v544_v28  ;;  %v1818_v47 = vadd.f32 %v3449_v42, %v608_v33 }
  0xff   : > { %v3238_v25 = vpack.c.bf16 %v2068_v20, %v2068_v20  ;;  %v2009_v29 = vld [vmem:[#allocation2 + $0x70] sm:$0xff]  ;;  %1882 = vst.msk [vmem:[#allocation2 + $0x90] sm:$0xff] %vm268_vm1, %v1753_v26  ;;  %1946 = vst.msk [vmem:[#allocation2 + $0x290] sm:$0xff] %vm268_vm1, %v1817_v27  ;;  %v1291_v51 = vpop.f32.mrf.mxu0  ;;  %v1547_v52 = vpop.f32.mrf.mxu1  ;;  %v546_v14 = vld [vmem:[#allocation2 + $0xa8] sm:$0xff] }
 0x100   : > { %v2073_v30 = vld [vmem:[#allocation2 + $0x270] sm:$0xff]  ;;  %2645 = vst.msk [vmem:[%s4075_s26 + $0x24] sm:$0xf] %vm2635_vm2, %v3174_v24  ;;  %v3179_v34 = vpack.c.bf16 %v2009_v29, %v2009_v29  ;;  %v1752_v56 = vadd.f32 %v1291_v51, %v542_v38  ;;  %v1816_v57 = vadd.f32 %v1547_v52, %v606_v43  ;;  %v610_v19 = vld [vmem:[#allocation2 + $0x2a8] sm:$0xff] }
 0x101   : > { %2709 = vst.msk [vmem:[%s4075_s26 + $0x124] sm:$0xf] %vm2635_vm2, %v3238_v25  ;;  %v3243_v35 = vpack.c.bf16 %v2073_v30, %v2073_v30  ;;  %v2007_v39 = vld [vmem:[#allocation2 + $0x60] sm:$0xff]  ;;  %v3388_v61 = vpop.f32.mrf.mxu0  ;;  %v3452_v62 = vpop.f32.mrf.mxu1  ;;  %v551_v24 = vld [vmem:[#allocation2 + $0xd0] sm:$0xff] }
 0x102   : > { %v2071_v40 = vld [vmem:[#allocation2 + $0x260] sm:$0xff]  ;;  %2650 = vst.msk [vmem:[%s4075_s26 + $0x38] sm:$0xf] %vm2635_vm2, %v3179_v34  ;;  %v3177_v44 = vpack.c.bf16 %v2007_v39, %v2007_v39  ;;  %v1757_v2 = vadd.f32 %v3388_v61, %v547_v48  ;;  %v1821_v3 = vadd.f32 %v3452_v62, %v611_v53  ;;  %v615_v29 = vld [vmem:[#allocation2 + $0x2d0] sm:$0xff] }
 0x103   : > { %2714 = vst.msk [vmem:[%s4075_s26 + $0x138] sm:$0xf] %vm2635_vm2, %v3243_v35  ;;  %v3241_v45 = vpack.c.bf16 %v2071_v40, %v2071_v40  ;;  %v2010_v49 = vld [vmem:[#allocation2 + $0x78] sm:$0xff]  ;;  %v1304_v7 = vpop.f32.mrf.mxu0  ;;  %v1560_v8 = vpop.f32.mrf.mxu1  ;;  %v549_v34 = vld [vmem:[#allocation2 + $0xc0] sm:$0xff] }
 0x104   : > { %1880 = vst.msk [vmem:[#allocation2 + $0x80] sm:$0xff] %vm268_vm1, %v1751_v36  ;;  %1944 = vst.msk [vmem:[#allocation2 + $0x280] sm:$0xff] %vm268_vm1, %v1815_v37  ;;  %v2074_v50 = vld [vmem:[#allocation2 + $0x278] sm:$0xff]  ;;  %v3180_v54 = vpack.c.bf16 %v2010_v49, %v2010_v49  ;;  %v1755_v12 = vadd.f32 %v1304_v7, %v545_v58  ;;  %v1819_v13 = vadd.f32 %v1560_v8, %v609_v63  ;;  %v613_v39 = vld [vmem:[#allocation2 + $0x2c0] sm:$0xff] }
 0x105   : > { %2648 = vst.msk [vmem:[%s4075_s26 + $0x30] sm:$0xf] %vm2635_vm2, %v3177_v44  ;;  %2712 = vst.msk [vmem:[%s4075_s26 + $0x130] sm:$0xf] %vm2635_vm2, %v3241_v45  ;;  %v3244_v55 = vpack.c.bf16 %v2074_v50, %v2074_v50  ;;  %v2008_v59 = vld [vmem:[#allocation2 + $0x68] sm:$0xff]  ;;  %v3389_v17 = vpop.f32.mrf.mxu0  ;;  %v3453_v18 = vpop.f32.mrf.mxu1  ;;  %v552_v44 = vld [vmem:[#allocation2 + $0xd8] sm:$0xff] }
 0x106   : > { %1883 = vst.msk [vmem:[#allocation2 + $0x98] sm:$0xff] %vm268_vm1, %v1754_v46  ;;  %1947 = vst.msk [vmem:[#allocation2 + $0x298] sm:$0xff] %vm268_vm1, %v1818_v47  ;;  %v2072_v60 = vld [vmem:[#allocation2 + $0x268] sm:$0xff]  ;;  %v3178_v0 = vpack.c.bf16 %v2008_v59, %v2008_v59  ;;  %v2013_v5 = vld [vmem:[#allocation2 + $0x90] sm:$0xff]  ;;  %v1758_v22 = vadd.f32 %v3389_v17, %v548_v4  ;;  %v1822_v23 = vadd.f32 %v3453_v18, %v612_v9 }
 0x107   : > { %2651 = vst.msk [vmem:[%s4075_s26 + $0x3c] sm:$0xf] %vm2635_vm2, %v3180_v54  ;;  %2715 = vst.msk [vmem:[%s4075_s26 + $0x13c] sm:$0xf] %vm2635_vm2, %v3244_v55  ;;  %v3242_v1 = vpack.c.bf16 %v2072_v60, %v2072_v60  ;;  %v2077_v6 = vld [vmem:[#allocation2 + $0x290] sm:$0xff]  ;;  %v3183_v10 = vpack.c.bf16 %v2013_v5, %v2013_v5  ;;  %v1307_v27 = vpop.f32.mrf.mxu0  ;;  %v1563_v28 = vpop.f32.mrf.mxu1  ;;  %v616_v49 = vld [vmem:[#allocation2 + $0x2d8] sm:$0xff] }
 0x108   : > { %1881 = vst.msk [vmem:[#allocation2 + $0x88] sm:$0xff] %vm268_vm1, %v1752_v56  ;;  %1945 = vst.msk [vmem:[#allocation2 + $0x288] sm:$0xff] %vm268_vm1, %v1816_v57  ;;  %v3247_v11 = vpack.c.bf16 %v2077_v6, %v2077_v6  ;;  %v1756_v32 = vadd.f32 %v1307_v27, %v546_v14  ;;  %v1820_v33 = vadd.f32 %v1563_v28, %v610_v19  ;;  %v550_v54 = vld [vmem:[#allocation2 + $0xc8] sm:$0xff]  ;;  %v619_v5 = vld [vmem:[#allocation2 + $0x2f0] sm:$0xff] }
 0x109   : > { %2649 = vst.msk [vmem:[%s4075_s26 + $0x34] sm:$0xf] %vm2635_vm2, %v3178_v0  ;;  %2713 = vst.msk [vmem:[%s4075_s26 + $0x134] sm:$0xf] %vm2635_vm2, %v3242_v1  ;;  %v3392_v37 = vpop.f32.mrf.mxu0  ;;  %v3456_v38 = vpop.f32.mrf.mxu1  ;;  %v614_v59 = vld [vmem:[#allocation2 + $0x2c8] sm:$0xff]  ;;  %v555_v0 = vld [vmem:[#allocation2 + $0xf0] sm:$0xff] }
 0x10a   : > { %1886 = vst.msk [vmem:[#allocation2 + $0xb0] sm:$0xff] %vm268_vm1, %v1757_v2  ;;  %1950 = vst.msk [vmem:[#allocation2 + $0x2b0] sm:$0xff] %vm268_vm1, %v1821_v3  ;;  %v1761_v42 = vadd.f32 %v3392_v37, %v551_v24  ;;  %v1825_v43 = vadd.f32 %v3456_v38, %v615_v29 }
 0x10b   : > { %v2011_v15 = vld [vmem:[#allocation2 + $0x80] sm:$0xff]  ;;  %2654 = vst.msk [vmem:[%s4075_s26 + $0x48] sm:$0xf] %vm2635_vm2, %v3183_v10  ;;  %2718 = vst.msk [vmem:[%s4075_s26 + $0x148] sm:$0xf] %vm2635_vm2, %v3247_v11  ;;  %v1320_v47 = vpop.f32.mrf.mxu0  ;;  %v1576_v48 = vpop.f32.mrf.mxu1 }
 0x10c   : > { %v2075_v16 = vld [vmem:[#allocation2 + $0x280] sm:$0xff]  ;;  %v3181_v20 = vpack.c.bf16 %v2011_v15, %v2011_v15  ;;  %1884 = vst.msk [vmem:[#allocation2 + $0xa0] sm:$0xff] %vm268_vm1, %v1755_v12  ;;  %1948 = vst.msk [vmem:[#allocation2 + $0x2a0] sm:$0xff] %vm268_vm1, %v1819_v13  ;;  %v1759_v52 = vadd.f32 %v1320_v47, %v549_v34  ;;  %v1823_v53 = vadd.f32 %v1576_v48, %v613_v39 }
 0x10d   : > { %v3245_v21 = vpack.c.bf16 %v2075_v16, %v2075_v16  ;;  %v2014_v25 = vld [vmem:[#allocation2 + $0x98] sm:$0xff]  ;;  %1887 = vst.msk [vmem:[#allocation2 + $0xb8] sm:$0xff] %vm268_vm1, %v1758_v22  ;;  %1951 = vst.msk [vmem:[#allocation2 + $0x2b8] sm:$0xff] %vm268_vm1, %v1822_v23  ;;  %v3393_v57 = vpop.f32.mrf.mxu0  ;;  %v3457_v58 = vpop.f32.mrf.mxu1  ;;  %v553_v10 = vld [vmem:[#allocation2 + $0xe0] sm:$0xff] }
 0x10e   : > { %v2078_v26 = vld [vmem:[#allocation2 + $0x298] sm:$0xff]  ;;  %2652 = vst.msk [vmem:[%s4075_s26 + $0x40] sm:$0xf] %vm2635_vm2, %v3181_v20  ;;  %v3184_v30 = vpack.c.bf16 %v2014_v25, %v2014_v25  ;;  %v1762_v62 = vadd.f32 %v3393_v57, %v552_v44  ;;  %v1826_v63 = vadd.f32 %v3457_v58, %v616_v49  ;;  %v617_v15 = vld [vmem:[#allocation2 + $0x2e0] sm:$0xff] }
 0x10f   : > { %2716 = vst.msk [vmem:[%s4075_s26 + $0x140] sm:$0xf] %vm2635_vm2, %v3245_v21  ;;  %v3248_v31 = vpack.c.bf16 %v2078_v26, %v2078_v26  ;;  %v2012_v35 = vld [vmem:[#allocation2 + $0x88] sm:$0xff]  ;;  %v1323_v3 = vpop.f32.mrf.mxu0  ;;  %v1579_v4 = vpop.f32.mrf.mxu1  ;;  %v556_v20 = vld [vmem:[#allocation2 + $0xf8] sm:$0xff] }
 0x110   : > { %v2076_v36 = vld [vmem:[#allocation2 + $0x288] sm:$0xff]  ;;  %2655 = vst.msk [vmem:[%s4075_s26 + $0x4c] sm:$0xf] %vm2635_vm2, %v3184_v30  ;;  %v3182_v40 = vpack.c.bf16 %v2012_v35, %v2012_v35  ;;  %v1760_v8 = vadd.f32 %v1323_v3, %v550_v54  ;;  %v1824_v9 = vadd.f32 %v1579_v4, %v614_v59  ;;  %v620_v25 = vld [vmem:[#allocation2 + $0x2f8] sm:$0xff] }
 0x111   : > { %2719 = vst.msk [vmem:[%s4075_s26 + $0x14c] sm:$0xf] %vm2635_vm2, %v3248_v31  ;;  %v3246_v41 = vpack.c.bf16 %v2076_v36, %v2076_v36  ;;  %v2017_v45 = vld [vmem:[#allocation2 + $0xb0] sm:$0xff]  ;;  %v3396_v13 = vpop.f32.mrf.mxu0  ;;  %v3460_v14 = vpop.f32.mrf.mxu1  ;;  %v554_v30 = vld [vmem:[#allocation2 + $0xe8] sm:$0xff] }
 0x112   : > { %1885 = vst.msk [vmem:[#allocation2 + $0xa8] sm:$0xff] %vm268_vm1, %v1756_v32  ;;  %1949 = vst.msk [vmem:[#allocation2 + $0x2a8] sm:$0xff] %vm268_vm1, %v1820_v33  ;;  %v2081_v46 = vld [vmem:[#allocation2 + $0x2b0] sm:$0xff]  ;;  %v3187_v50 = vpack.c.bf16 %v2017_v45, %v2017_v45  ;;  %v1765_v18 = vadd.f32 %v3396_v13, %v555_v0  ;;  %v1829_v19 = vadd.f32 %v3460_v14, %v619_v5  ;;  %v618_v35 = vld [vmem:[#allocation2 + $0x2e8] sm:$0xff] }
 0x113   : > { %2653 = vst.msk [vmem:[%s4075_s26 + $0x44] sm:$0xf] %vm2635_vm2, %v3182_v40  ;;  %2717 = vst.msk [vmem:[%s4075_s26 + $0x144] sm:$0xf] %vm2635_vm2, %v3246_v41  ;;  %v3251_v51 = vpack.c.bf16 %v2081_v46, %v2081_v46  ;;  %v2015_v55 = vld [vmem:[#allocation2 + $0xa0] sm:$0xff]  ;;  %v1336_v23 = vpop.f32.mrf.mxu0  ;;  %v1592_v24 = vpop.f32.mrf.mxu1  ;;  %v559_v40 = vld [vmem:[#allocation2 + $0x110] sm:$0xff] }
 0x114   : > { %1890 = vst.msk [vmem:[#allocation2 + $0xd0] sm:$0xff] %vm268_vm1, %v1761_v42  ;;  %1954 = vst.msk [vmem:[#allocation2 + $0x2d0] sm:$0xff] %vm268_vm1, %v1825_v43  ;;  %v2079_v56 = vld [vmem:[#allocation2 + $0x2a0] sm:$0xff]  ;;  %v3185_v60 = vpack.c.bf16 %v2015_v55, %v2015_v55  ;;  %v2018_v1 = vld [vmem:[#allocation2 + $0xb8] sm:$0xff]  ;;  %v1763_v28 = vadd.f32 %v1336_v23, %v553_v10  ;;  %v1827_v29 = vadd.f32 %v1592_v24, %v617_v15 }
 0x115   : > { %2658 = vst.msk [vmem:[%s4075_s26 + $0x58] sm:$0xf] %vm2635_vm2, %v3187_v50  ;;  %2722 = vst.msk [vmem:[%s4075_s26 + $0x158] sm:$0xf] %vm2635_vm2, %v3251_v51  ;;  %v3249_v61 = vpack.c.bf16 %v2079_v56, %v2079_v56  ;;  %v2082_v2 = vld [vmem:[#allocation2 + $0x2b8] sm:$0xff]  ;;  %v3188_v6 = vpack.c.bf16 %v2018_v1, %v2018_v1  ;;  %v3397_v33 = vpop.f32.mrf.mxu0  ;;  %v3461_v34 = vpop.f32.mrf.mxu1  ;;  %v623_v45 = vld [vmem:[#allocation2 + $0x310] sm:$0xff] }
 0x116   : > { %1888 = vst.msk [vmem:[#allocation2 + $0xc0] sm:$0xff] %vm268_vm1, %v1759_v52  ;;  %1952 = vst.msk [vmem:[#allocation2 + $0x2c0] sm:$0xff] %vm268_vm1, %v1823_v53  ;;  %v3252_v7 = vpack.c.bf16 %v2082_v2, %v2082_v2  ;;  %v1766_v38 = vadd.f32 %v3397_v33, %v556_v20  ;;  %v1830_v39 = vadd.f32 %v3461_v34, %v620_v25  ;;  %v557_v50 = vld [vmem:[#allocation2 + $0x100] sm:$0xff]  ;;  %v624_v1 = vld [vmem:[#allocation2 + $0x318] sm:$0xff] }
 0x117   : > { %2656 = vst.msk [vmem:[%s4075_s26 + $0x50] sm:$0xf] %vm2635_vm2, %v3185_v60  ;;  %2720 = vst.msk [vmem:[%s4075_s26 + $0x150] sm:$0xf] %vm2635_vm2, %v3249_v61  ;;  %v1339_v43 = vpop.f32.mrf.mxu0  ;;  %v1595_v44 = vpop.f32.mrf.mxu1  ;;  %v621_v55 = vld [vmem:[#allocation2 + $0x300] sm:$0xff]  ;;  %v560_v60 = vld [vmem:[#allocation2 + $0x118] sm:$0xff] }
 0x118   : > { %1891 = vst.msk [vmem:[#allocation2 + $0xd8] sm:$0xff] %vm268_vm1, %v1762_v62  ;;  %1955 = vst.msk [vmem:[#allocation2 + $0x2d8] sm:$0xff] %vm268_vm1, %v1826_v63  ;;  %v1764_v48 = vadd.f32 %v1339_v43, %v554_v30  ;;  %v1828_v49 = vadd.f32 %v1595_v44, %v618_v35 }
 0x119   : > { %v2016_v11 = vld [vmem:[#allocation2 + $0xa8] sm:$0xff]  ;;  %2659 = vst.msk [vmem:[%s4075_s26 + $0x5c] sm:$0xf] %vm2635_vm2, %v3188_v6  ;;  %2723 = vst.msk [vmem:[%s4075_s26 + $0x15c] sm:$0xf] %vm2635_vm2, %v3252_v7  ;;  %v3400_v53 = vpop.f32.mrf.mxu0  ;;  %v3464_v54 = vpop.f32.mrf.mxu1 }
 0x11a   : > { %v2080_v12 = vld [vmem:[#allocation2 + $0x2a8] sm:$0xff]  ;;  %v3186_v16 = vpack.c.bf16 %v2016_v11, %v2016_v11  ;;  %1889 = vst.msk [vmem:[#allocation2 + $0xc8] sm:$0xff] %vm268_vm1, %v1760_v8  ;;  %1953 = vst.msk [vmem:[#allocation2 + $0x2c8] sm:$0xff] %vm268_vm1, %v1824_v9  ;;  %v1769_v58 = vadd.f32 %v3400_v53, %v559_v40  ;;  %v1833_v59 = vadd.f32 %v3464_v54, %v623_v45 }
 0x11b   : > { %v3250_v17 = vpack.c.bf16 %v2080_v12, %v2080_v12  ;;  %v2021_v21 = vld [vmem:[#allocation2 + $0xd0] sm:$0xff]  ;;  %1894 = vst.msk [vmem:[#allocation2 + $0xf0] sm:$0xff] %vm268_vm1, %v1765_v18  ;;  %1958 = vst.msk [vmem:[#allocation2 + $0x2f0] sm:$0xff] %vm268_vm1, %v1829_v19  ;;  %v1352_v63 = vpop.f32.mrf.mxu0  ;;  %v1608_v0 = vpop.f32.mrf.mxu1  ;;  %v558_v6 = vld [vmem:[#allocation2 + $0x108] sm:$0xff] }
 0x11c   : > { %v2085_v22 = vld [vmem:[#allocation2 + $0x2d0] sm:$0xff]  ;;  %2657 = vst.msk [vmem:[%s4075_s26 + $0x54] sm:$0xf] %vm2635_vm2, %v3186_v16  ;;  %v3191_v26 = vpack.c.bf16 %v2021_v21, %v2021_v21  ;;  %v1767_v4 = vadd.f32 %v1352_v63, %v557_v50  ;;  %v1831_v5 = vadd.f32 %v1608_v0, %v621_v55  ;;  %v622_v11 = vld [vmem:[#allocation2 + $0x308] sm:$0xff] }
 0x11d   : > { %2721 = vst.msk [vmem:[%s4075_s26 + $0x154] sm:$0xf] %vm2635_vm2, %v3250_v17  ;;  %v3255_v27 = vpack.c.bf16 %v2085_v22, %v2085_v22  ;;  %v2019_v31 = vld [vmem:[#allocation2 + $0xc0] sm:$0xff]  ;;  %v3401_v9 = vpop.f32.mrf.mxu0  ;;  %v3465_v10 = vpop.f32.mrf.mxu1  ;;  %v563_v16 = vld [vmem:[#allocation2 + $0x130] sm:$0xff] }
 0x11e   : > { %v2083_v32 = vld [vmem:[#allocation2 + $0x2c0] sm:$0xff]  ;;  %2662 = vst.msk [vmem:[%s4075_s26 + $0x68] sm:$0xf] %vm2635_vm2, %v3191_v26  ;;  %v3189_v36 = vpack.c.bf16 %v2019_v31, %v2019_v31  ;;  %v1770_v14 = vadd.f32 %v3401_v9, %v560_v60  ;;  %v1834_v15 = vadd.f32 %v3465_v10, %v624_v1  ;;  %v627_v21 = vld [vmem:[#allocation2 + $0x330] sm:$0xff] }
 0x11f   : > { %2726 = vst.msk [vmem:[%s4075_s26 + $0x168] sm:$0xf] %vm2635_vm2, %v3255_v27  ;;  %v3253_v37 = vpack.c.bf16 %v2083_v32, %v2083_v32  ;;  %v2022_v41 = vld [vmem:[#allocation2 + $0xd8] sm:$0xff]  ;;  %v1355_v19 = vpop.f32.mrf.mxu0  ;;  %v1611_v20 = vpop.f32.mrf.mxu1  ;;  %v561_v26 = vld [vmem:[#allocation2 + $0x120] sm:$0xff] }
 0x120   : > { %1892 = vst.msk [vmem:[#allocation2 + $0xe0] sm:$0xff] %vm268_vm1, %v1763_v28  ;;  %1956 = vst.msk [vmem:[#allocation2 + $0x2e0] sm:$0xff] %vm268_vm1, %v1827_v29  ;;  %v2086_v42 = vld [vmem:[#allocation2 + $0x2d8] sm:$0xff]  ;;  %v3192_v46 = vpack.c.bf16 %v2022_v41, %v2022_v41  ;;  %v1768_v24 = vadd.f32 %v1355_v19, %v558_v6  ;;  %v1832_v25 = vadd.f32 %v1611_v20, %v622_v11  ;;  %v625_v31 = vld [vmem:[#allocation2 + $0x320] sm:$0xff] }
 0x121   : > { %2660 = vst.msk [vmem:[%s4075_s26 + $0x60] sm:$0xf] %vm2635_vm2, %v3189_v36  ;;  %2724 = vst.msk [vmem:[%s4075_s26 + $0x160] sm:$0xf] %vm2635_vm2, %v3253_v37  ;;  %v3256_v47 = vpack.c.bf16 %v2086_v42, %v2086_v42  ;;  %v2020_v51 = vld [vmem:[#allocation2 + $0xc8] sm:$0xff]  ;;  %v3404_v29 = vpop.f32.mrf.mxu0  ;;  %v3468_v30 = vpop.f32.mrf.mxu1  ;;  %v564_v36 = vld [vmem:[#allocation2 + $0x138] sm:$0xff] }
 0x122   : > { %1895 = vst.msk [vmem:[#allocation2 + $0xf8] sm:$0xff] %vm268_vm1, %v1766_v38  ;;  %1959 = vst.msk [vmem:[#allocation2 + $0x2f8] sm:$0xff] %vm268_vm1, %v1830_v39  ;;  %v2084_v52 = vld [vmem:[#allocation2 + $0x2c8] sm:$0xff]  ;;  %v3190_v56 = vpack.c.bf16 %v2020_v51, %v2020_v51  ;;  %v2025_v61 = vld [vmem:[#allocation2 + $0xf0] sm:$0xff]  ;;  %v1773_v34 = vadd.f32 %v3404_v29, %v563_v16  ;;  %v1837_v35 = vadd.f32 %v3468_v30, %v627_v21 }
 0x123   : > { %2663 = vst.msk [vmem:[%s4075_s26 + $0x6c] sm:$0xf] %vm2635_vm2, %v3192_v46  ;;  %2727 = vst.msk [vmem:[%s4075_s26 + $0x16c] sm:$0xf] %vm2635_vm2, %v3256_v47  ;;  %v3254_v57 = vpack.c.bf16 %v2084_v52, %v2084_v52  ;;  %v2089_v62 = vld [vmem:[#allocation2 + $0x2f0] sm:$0xff]  ;;  %v3195_v2 = vpack.c.bf16 %v2025_v61, %v2025_v61  ;;  %v1368_v39 = vpop.f32.mrf.mxu0  ;;  %v1624_v40 = vpop.f32.mrf.mxu1  ;;  %v628_v41 = vld [vmem:[#allocation2 + $0x338] sm:$0xff] }
 0x124   : > { %1893 = vst.msk [vmem:[#allocation2 + $0xe8] sm:$0xff] %vm268_vm1, %v1764_v48  ;;  %1957 = vst.msk [vmem:[#allocation2 + $0x2e8] sm:$0xff] %vm268_vm1, %v1828_v49  ;;  %v3259_v3 = vpack.c.bf16 %v2089_v62, %v2089_v62  ;;  %v1771_v44 = vadd.f32 %v1368_v39, %v561_v26  ;;  %v1835_v45 = vadd.f32 %v1624_v40, %v625_v31  ;;  %v562_v46 = vld [vmem:[#allocation2 + $0x128] sm:$0xff]  ;;  %v631_v61 = vld [vmem:[#allocation2 + $0x350] sm:$0xff] }
 0x125   : > { %2661 = vst.msk [vmem:[%s4075_s26 + $0x64] sm:$0xf] %vm2635_vm2, %v3190_v56  ;;  %2725 = vst.msk [vmem:[%s4075_s26 + $0x164] sm:$0xf] %vm2635_vm2, %v3254_v57  ;;  %v3405_v49 = vpop.f32.mrf.mxu0  ;;  %v3469_v50 = vpop.f32.mrf.mxu1  ;;  %v626_v51 = vld [vmem:[#allocation2 + $0x328] sm:$0xff]  ;;  %v567_v56 = vld [vmem:[#allocation2 + $0x150] sm:$0xff] }
 0x126   : > { %1898 = vst.msk [vmem:[#allocation2 + $0x110] sm:$0xff] %vm268_vm1, %v1769_v58  ;;  %1962 = vst.msk [vmem:[#allocation2 + $0x310] sm:$0xff] %vm268_vm1, %v1833_v59  ;;  %v1774_v54 = vadd.f32 %v3405_v49, %v564_v36  ;;  %v1838_v55 = vadd.f32 %v3469_v50, %v628_v41 }
 0x127   : > { %v2023_v7 = vld [vmem:[#allocation2 + $0xe0] sm:$0xff]  ;;  %2666 = vst.msk [vmem:[%s4075_s26 + $0x78] sm:$0xf] %vm2635_vm2, %v3195_v2  ;;  %2730 = vst.msk [vmem:[%s4075_s26 + $0x178] sm:$0xf] %vm2635_vm2, %v3259_v3  ;;  %v1371_v59 = vpop.f32.mrf.mxu0  ;;  %v1627_v60 = vpop.f32.mrf.mxu1 }
 0x128   : > { %v2087_v8 = vld [vmem:[#allocation2 + $0x2e0] sm:$0xff]  ;;  %v3193_v12 = vpack.c.bf16 %v2023_v7, %v2023_v7  ;;  %1896 = vst.msk [vmem:[#allocation2 + $0x100] sm:$0xff] %vm268_vm1, %v1767_v4  ;;  %1960 = vst.msk [vmem:[#allocation2 + $0x300] sm:$0xff] %vm268_vm1, %v1831_v5  ;;  %v1772_v0 = vadd.f32 %v1371_v59, %v562_v46  ;;  %v1836_v1 = vadd.f32 %v1627_v60, %v626_v51 }
 0x129   : > { %v3257_v13 = vpack.c.bf16 %v2087_v8, %v2087_v8  ;;  %v2026_v17 = vld [vmem:[#allocation2 + $0xf8] sm:$0xff]  ;;  %1899 = vst.msk [vmem:[#allocation2 + $0x118] sm:$0xff] %vm268_vm1, %v1770_v14  ;;  %1963 = vst.msk [vmem:[#allocation2 + $0x318] sm:$0xff] %vm268_vm1, %v1834_v15  ;;  %v565_v2 = vld [vmem:[#allocation2 + $0x140] sm:$0xff]  ;;  %v3408_v5 = vpop.f32.mrf.mxu0  ;;  %v3472_v6 = vpop.f32.mrf.mxu1 }
 0x12a   : > { %v2090_v18 = vld [vmem:[#allocation2 + $0x2f8] sm:$0xff]  ;;  %2664 = vst.msk [vmem:[%s4075_s26 + $0x70] sm:$0xf] %vm2635_vm2, %v3193_v12  ;;  %v3196_v22 = vpack.c.bf16 %v2026_v17, %v2026_v17  ;;  %v629_v7 = vld [vmem:[#allocation2 + $0x340] sm:$0xff]  ;;  %v1777_v10 = vadd.f32 %v3408_v5, %v567_v56  ;;  %v1841_v11 = vadd.f32 %v3472_v6, %v631_v61 }
 0x12b   : > { %2728 = vst.msk [vmem:[%s4075_s26 + $0x170] sm:$0xf] %vm2635_vm2, %v3257_v13  ;;  %v3260_v23 = vpack.c.bf16 %v2090_v18, %v2090_v18  ;;  %v2024_v27 = vld [vmem:[#allocation2 + $0xe8] sm:$0xff]  ;;  %v568_v12 = vld [vmem:[#allocation2 + $0x158] sm:$0xff]  ;;  %v1384_v15 = vpop.f32.mrf.mxu0  ;;  %v1640_v16 = vpop.f32.mrf.mxu1 }
 0x12c   : > { %v2088_v28 = vld [vmem:[#allocation2 + $0x2e8] sm:$0xff]  ;;  %2667 = vst.msk [vmem:[%s4075_s26 + $0x7c] sm:$0xf] %vm2635_vm2, %v3196_v22  ;;  %v3194_v32 = vpack.c.bf16 %v2024_v27, %v2024_v27  ;;  %v632_v17 = vld [vmem:[#allocation2 + $0x358] sm:$0xff]  ;;  %v1775_v20 = vadd.f32 %v1384_v15, %v565_v2  ;;  %v1839_v21 = vadd.f32 %v1640_v16, %v629_v7 }
 0x12d   : > { %2731 = vst.msk [vmem:[%s4075_s26 + $0x17c] sm:$0xf] %vm2635_vm2, %v3260_v23  ;;  %v3258_v33 = vpack.c.bf16 %v2088_v28, %v2088_v28  ;;  %v2029_v37 = vld [vmem:[#allocation2 + $0x110] sm:$0xff]  ;;  %v566_v22 = vld [vmem:[#allocation2 + $0x148] sm:$0xff]  ;;  %v3473_v26 = vpop.f32.mrf.mxu1 }
 0x12e   : > { %1897 = vst.msk [vmem:[#allocation2 + $0x108] sm:$0xff] %vm268_vm1, %v1768_v24  ;;  %1961 = vst.msk [vmem:[#allocation2 + $0x308] sm:$0xff] %vm268_vm1, %v1832_v25  ;;  %v2093_v38 = vld [vmem:[#allocation2 + $0x310] sm:$0xff]  ;;  %v3199_v42 = vpack.c.bf16 %v2029_v37, %v2029_v37  ;;  %v3409_v25 = vpop.f32.mrf.mxu0  ;;  %v630_v27 = vld [vmem:[#allocation2 + $0x348] sm:$0xff]  ;;  %v1842_v31 = vadd.f32 %v3473_v26, %v632_v17 }
 0x12f   : > { %2665 = vst.msk [vmem:[%s4075_s26 + $0x74] sm:$0xf] %vm2635_vm2, %v3194_v32  ;;  %2729 = vst.msk [vmem:[%s4075_s26 + $0x174] sm:$0xf] %vm2635_vm2, %v3258_v33  ;;  %v3263_v43 = vpack.c.bf16 %v2093_v38, %v2093_v38  ;;  %v2027_v47 = vld [vmem:[#allocation2 + $0x100] sm:$0xff]  ;;  %v1778_v30 = vadd.f32 %v3409_v25, %v568_v12  ;;  %v571_v32 = vld [vmem:[#allocation2 + $0x170] sm:$0xff]  ;;  %v1643_v36 = vpop.f32.mrf.mxu1 }
 0x130   : > { %1902 = vst.msk [vmem:[#allocation2 + $0x130] sm:$0xff] %vm268_vm1, %v1773_v34  ;;  %1966 = vst.msk [vmem:[#allocation2 + $0x330] sm:$0xff] %vm268_vm1, %v1837_v35  ;;  %v2091_v48 = vld [vmem:[#allocation2 + $0x300] sm:$0xff]  ;;  %v3197_v52 = vpack.c.bf16 %v2027_v47, %v2027_v47  ;;  %v2030_v57 = vld [vmem:[#allocation2 + $0x118] sm:$0xff]  ;;  %v1387_v35 = vpop.f32.mrf.mxu0  ;;  %v1840_v41 = vadd.f32 %v1643_v36, %v630_v27 }
 0x131   : > { %2670 = vst.msk [vmem:[%s4075_s26 + $0x88] sm:$0xf] %vm2635_vm2, %v3199_v42  ;;  %2734 = vst.msk [vmem:[%s4075_s26 + $0x188] sm:$0xf] %vm2635_vm2, %v3263_v43  ;;  %v3261_v53 = vpack.c.bf16 %v2091_v48, %v2091_v48  ;;  %v2094_v58 = vld [vmem:[#allocation2 + $0x318] sm:$0xff]  ;;  %v3200_v62 = vpack.c.bf16 %v2030_v57, %v2030_v57  ;;  %v635_v37 = vld [vmem:[#allocation2 + $0x370] sm:$0xff]  ;;  %v1776_v40 = vadd.f32 %v1387_v35, %v566_v22  ;;  %v3476_v46 = vpop.f32.mrf.mxu1 }
 0x132   : > { %1900 = vst.msk [vmem:[#allocation2 + $0x120] sm:$0xff] %vm268_vm1, %v1771_v44  ;;  %1964 = vst.msk [vmem:[#allocation2 + $0x320] sm:$0xff] %vm268_vm1, %v1835_v45  ;;  %v3264_v63 = vpack.c.bf16 %v2094_v58, %v2094_v58  ;;  %v569_v42 = vld [vmem:[#allocation2 + $0x160] sm:$0xff]  ;;  %v3412_v45 = vpop.f32.mrf.mxu0  ;;  %v1845_v51 = vadd.f32 %v3476_v46, %v635_v37  ;;  %v636_v57 = vld [vmem:[#allocation2 + $0x378] sm:$0xff] }
 0x133   : > { %2668 = vst.msk [vmem:[%s4075_s26 + $0x80] sm:$0xf] %vm2635_vm2, %v3197_v52  ;;  %2732 = vst.msk [vmem:[%s4075_s26 + $0x180] sm:$0xf] %vm2635_vm2, %v3261_v53  ;;  %v633_v47 = vld [vmem:[#allocation2 + $0x360] sm:$0xff]  ;;  %v1781_v50 = vadd.f32 %v3412_v45, %v571_v32  ;;  %v572_v52 = vld [vmem:[#allocation2 + $0x178] sm:$0xff]  ;;  %v1656_v56 = vpop.f32.mrf.mxu1 }
 0x134   : > { %1903 = vst.msk [vmem:[#allocation2 + $0x138] sm:$0xff] %vm268_vm1, %v1774_v54  ;;  %1967 = vst.msk [vmem:[#allocation2 + $0x338] sm:$0xff] %vm268_vm1, %v1838_v55  ;;  %v1400_v55 = vpop.f32.mrf.mxu0  ;;  %v1843_v61 = vadd.f32 %v1656_v56, %v633_v47 }
 0x135   : > { %v2028_v3 = vld [vmem:[#allocation2 + $0x108] sm:$0xff]  ;;  %2671 = vst.msk [vmem:[%s4075_s26 + $0x8c] sm:$0xf] %vm2635_vm2, %v3200_v62  ;;  %2735 = vst.msk [vmem:[%s4075_s26 + $0x18c] sm:$0xf] %vm2635_vm2, %v3264_v63  ;;  %v1779_v60 = vadd.f32 %v1400_v55, %v569_v42  ;;  %v3477_v2 = vpop.f32.mrf.mxu1 }
 0x136   : > { %v2092_v4 = vld [vmem:[#allocation2 + $0x308] sm:$0xff]  ;;  %v3198_v8 = vpack.c.bf16 %v2028_v3, %v2028_v3  ;;  %1901 = vst.msk [vmem:[#allocation2 + $0x128] sm:$0xff] %vm268_vm1, %v1772_v0  ;;  %1965 = vst.msk [vmem:[#allocation2 + $0x328] sm:$0xff] %vm268_vm1, %v1836_v1  ;;  %v3413_v1 = vpop.f32.mrf.mxu0  ;;  %v1846_v7 = vadd.f32 %v3477_v2, %v636_v57 }
 0x137   : > { %v3262_v9 = vpack.c.bf16 %v2092_v4, %v2092_v4  ;;  %v2033_v13 = vld [vmem:[#allocation2 + $0x130] sm:$0xff]  ;;  %1906 = vst.msk [vmem:[#allocation2 + $0x150] sm:$0xff] %vm268_vm1, %v1777_v10  ;;  %1970 = vst.msk [vmem:[#allocation2 + $0x350] sm:$0xff] %vm268_vm1, %v1841_v11  ;;  %v570_v62 = vld [vmem:[#allocation2 + $0x168] sm:$0xff]  ;;  %v1782_v6 = vadd.f32 %v3413_v1, %v572_v52  ;;  %v1659_v12 = vpop.f32.mrf.mxu1 }
 0x138   : > { %v2097_v14 = vld [vmem:[#allocation2 + $0x330] sm:$0xff]  ;;  %2669 = vst.msk [vmem:[%s4075_s26 + $0x84] sm:$0xf] %vm2635_vm2, %v3198_v8  ;;  %v3203_v18 = vpack.c.bf16 %v2033_v13, %v2033_v13  ;;  %v634_v3 = vld [vmem:[#allocation2 + $0x368] sm:$0xff]  ;;  %v1403_v11 = vpop.f32.mrf.mxu0 }
 0x139   : > { %2733 = vst.msk [vmem:[%s4075_s26 + $0x184] sm:$0xf] %vm2635_vm2, %v3262_v9  ;;  %v3267_v19 = vpack.c.bf16 %v2097_v14, %v2097_v14  ;;  %v2031_v23 = vld [vmem:[#allocation2 + $0x120] sm:$0xff]  ;;  %v575_v8 = vld [vmem:[#allocation2 + $0x190] sm:$0xff]  ;;  %v1780_v16 = vadd.f32 %v1403_v11, %v570_v62  ;;  %v1844_v17 = vadd.f32 %v1659_v12, %v634_v3  ;;  %v3480_v22 = vpop.f32.mrf.mxu1 }
 0x13a   : > { %v2095_v24 = vld [vmem:[#allocation2 + $0x320] sm:$0xff]  ;;  %2674 = vst.msk [vmem:[%s4075_s26 + $0x98] sm:$0xf] %vm2635_vm2, %v3203_v18  ;;  %v3201_v28 = vpack.c.bf16 %v2031_v23, %v2031_v23  ;;  %v639_v13 = vld [vmem:[#allocation2 + $0x390] sm:$0xff] }
 0x13b   : > { %2738 = vst.msk [vmem:[%s4075_s26 + $0x198] sm:$0xf] %vm2635_vm2, %v3267_v19  ;;  %v3265_v29 = vpack.c.bf16 %v2095_v24, %v2095_v24  ;;  %v2034_v33 = vld [vmem:[#allocation2 + $0x138] sm:$0xff]  ;;  %v573_v18 = vld [vmem:[#allocation2 + $0x180] sm:$0xff]  ;;  %v1849_v27 = vadd.f32 %v3480_v22, %v639_v13  ;;  %v1672_v32 = vpop.f32.mrf.mxu1 }
 0x13c   : > { %1904 = vst.msk [vmem:[#allocation2 + $0x140] sm:$0xff] %vm268_vm1, %v1775_v20  ;;  %1968 = vst.msk [vmem:[#allocation2 + $0x340] sm:$0xff] %vm268_vm1, %v1839_v21  ;;  %v2098_v34 = vld [vmem:[#allocation2 + $0x338] sm:$0xff]  ;;  %v3204_v38 = vpack.c.bf16 %v2034_v33, %v2034_v33  ;;  %v3416_v21 = vpop.f32.mrf.mxu0  ;;  %v637_v23 = vld [vmem:[#allocation2 + $0x380] sm:$0xff] }
 0x13d   : > { %2672 = vst.msk [vmem:[%s4075_s26 + $0x90] sm:$0xf] %vm2635_vm2, %v3201_v28  ;;  %2736 = vst.msk [vmem:[%s4075_s26 + $0x190] sm:$0xf] %vm2635_vm2, %v3265_v29  ;;  %v3268_v39 = vpack.c.bf16 %v2098_v34, %v2098_v34  ;;  %v2032_v43 = vld [vmem:[#allocation2 + $0x128] sm:$0xff]  ;;  %v1785_v26 = vadd.f32 %v3416_v21, %v575_v8  ;;  %v576_v28 = vld [vmem:[#allocation2 + $0x198] sm:$0xff]  ;;  %v1847_v37 = vadd.f32 %v1672_v32, %v637_v23  ;;  %v3481_v42 = vpop.f32.mrf.mxu1 }
 0x13e   : > { %1907 = vst.msk [vmem:[#allocation2 + $0x158] sm:$0xff] %vm268_vm1, %v1778_v30  ;;  %1971 = vst.msk [vmem:[#allocation2 + $0x358] sm:$0xff] %vm268_vm1, %v1842_v31  ;;  %v2096_v44 = vld [vmem:[#allocation2 + $0x328] sm:$0xff]  ;;  %v3202_v48 = vpack.c.bf16 %v2032_v43, %v2032_v43  ;;  %v2037_v53 = vld [vmem:[#allocation2 + $0x150] sm:$0xff]  ;;  %v1416_v31 = vpop.f32.mrf.mxu0 }
 0x13f   : > { %2675 = vst.msk [vmem:[%s4075_s26 + $0x9c] sm:$0xf] %vm2635_vm2, %v3204_v38  ;;  %2739 = vst.msk [vmem:[%s4075_s26 + $0x19c] sm:$0xf] %vm2635_vm2, %v3268_v39  ;;  %v3266_v49 = vpack.c.bf16 %v2096_v44, %v2096_v44  ;;  %v2101_v54 = vld [vmem:[#allocation2 + $0x350] sm:$0xff]  ;;  %v3207_v58 = vpack.c.bf16 %v2037_v53, %v2037_v53  ;;  %v640_v33 = vld [vmem:[#allocation2 + $0x398] sm:$0xff]  ;;  %v1783_v36 = vadd.f32 %v1416_v31, %v573_v18  ;;  %v1675_v52 = vpop.f32.mrf.mxu1 }
 0x140   : > { %1905 = vst.msk [vmem:[#allocation2 + $0x148] sm:$0xff] %vm268_vm1, %v1776_v40  ;;  %1969 = vst.msk [vmem:[#allocation2 + $0x348] sm:$0xff] %vm268_vm1, %v1840_v41  ;;  %v3271_v59 = vpack.c.bf16 %v2101_v54, %v2101_v54  ;;  %v574_v38 = vld [vmem:[#allocation2 + $0x188] sm:$0xff]  ;;  %v3417_v41 = vpop.f32.mrf.mxu0  ;;  %v1850_v47 = vadd.f32 %v3481_v42, %v640_v33  ;;  %v643_v53 = vld [vmem:[#allocation2 + $0x3b0] sm:$0xff] }
 0x141   : > { %2673 = vst.msk [vmem:[%s4075_s26 + $0x94] sm:$0xf] %vm2635_vm2, %v3202_v48  ;;  %2737 = vst.msk [vmem:[%s4075_s26 + $0x194] sm:$0xf] %vm2635_vm2, %v3266_v49  ;;  %v638_v43 = vld [vmem:[#allocation2 + $0x388] sm:$0xff]  ;;  %v1786_v46 = vadd.f32 %v3417_v41, %v576_v28  ;;  %v579_v48 = vld [vmem:[#allocation2 + $0x1b0] sm:$0xff]  ;;  %v3484_v62 = vpop.f32.mrf.mxu1 }
 0x142   : > { %1910 = vst.msk [vmem:[#allocation2 + $0x170] sm:$0xff] %vm268_vm1, %v1781_v50  ;;  %1974 = vst.msk [vmem:[#allocation2 + $0x370] sm:$0xff] %vm268_vm1, %v1845_v51  ;;  %v1419_v51 = vpop.f32.mrf.mxu0  ;;  %v1848_v57 = vadd.f32 %v1675_v52, %v638_v43  ;;  %v1853_v3 = vadd.f32 %v3484_v62, %v643_v53 }
 0x143   : > { %v2035_v63 = vld [vmem:[#allocation2 + $0x140] sm:$0xff]  ;;  %2678 = vst.msk [vmem:[%s4075_s26 + $0xa8] sm:$0xf] %vm2635_vm2, %v3207_v58  ;;  %2742 = vst.msk [vmem:[%s4075_s26 + $0x1a8] sm:$0xf] %vm2635_vm2, %v3271_v59  ;;  %v1784_v56 = vadd.f32 %v1419_v51, %v574_v38  ;;  %v1688_v8 = vpop.f32.mrf.mxu1 }
 0x144   : > { %v2099_v0 = vld [vmem:[#allocation2 + $0x340] sm:$0xff]  ;;  %v3205_v4 = vpack.c.bf16 %v2035_v63, %v2035_v63  ;;  %1908 = vst.msk [vmem:[#allocation2 + $0x160] sm:$0xff] %vm268_vm1, %v1779_v60  ;;  %1972 = vst.msk [vmem:[#allocation2 + $0x360] sm:$0xff] %vm268_vm1, %v1843_v61  ;;  %v3420_v61 = vpop.f32.mrf.mxu0 }
 0x145   : > { %v3269_v5 = vpack.c.bf16 %v2099_v0, %v2099_v0  ;;  %v2038_v9 = vld [vmem:[#allocation2 + $0x158] sm:$0xff]  ;;  %1911 = vst.msk [vmem:[#allocation2 + $0x178] sm:$0xff] %vm268_vm1, %v1782_v6  ;;  %1975 = vst.msk [vmem:[#allocation2 + $0x378] sm:$0xff] %vm268_vm1, %v1846_v7  ;;  %v577_v58 = vld [vmem:[#allocation2 + $0x1a0] sm:$0xff]  ;;  %v1789_v2 = vadd.f32 %v3420_v61, %v579_v48  ;;  %v3485_v18 = vpop.f32.mrf.mxu1 }
 0x146   : > { %v2102_v10 = vld [vmem:[#allocation2 + $0x358] sm:$0xff]  ;;  %2676 = vst.msk [vmem:[%s4075_s26 + $0xa0] sm:$0xf] %vm2635_vm2, %v3205_v4  ;;  %v3208_v14 = vpack.c.bf16 %v2038_v9, %v2038_v9  ;;  %v641_v63 = vld [vmem:[#allocation2 + $0x3a0] sm:$0xff]  ;;  %v1432_v7 = vpop.f32.mrf.mxu0 }
 0x147   : > { %2740 = vst.msk [vmem:[%s4075_s26 + $0x1a0] sm:$0xf] %vm2635_vm2, %v3269_v5  ;;  %v3272_v15 = vpack.c.bf16 %v2102_v10, %v2102_v10  ;;  %v2036_v19 = vld [vmem:[#allocation2 + $0x148] sm:$0xff]  ;;  %v580_v4 = vld [vmem:[#allocation2 + $0x1b8] sm:$0xff]  ;;  %v1787_v12 = vadd.f32 %v1432_v7, %v577_v58  ;;  %v1851_v13 = vadd.f32 %v1688_v8, %v641_v63  ;;  %v1691_v28 = vpop.f32.mrf.mxu1 }
 0x148   : > { %v2100_v20 = vld [vmem:[#allocation2 + $0x348] sm:$0xff]  ;;  %2679 = vst.msk [vmem:[%s4075_s26 + $0xac] sm:$0xf] %vm2635_vm2, %v3208_v14  ;;  %v3206_v24 = vpack.c.bf16 %v2036_v19, %v2036_v19  ;;  %v644_v9 = vld [vmem:[#allocation2 + $0x3b8] sm:$0xff] }
 0x149   : > { %2743 = vst.msk [vmem:[%s4075_s26 + $0x1ac] sm:$0xf] %vm2635_vm2, %v3272_v15  ;;  %v3270_v25 = vpack.c.bf16 %v2100_v20, %v2100_v20  ;;  %v2041_v29 = vld [vmem:[#allocation2 + $0x170] sm:$0xff]  ;;  %v578_v14 = vld [vmem:[#allocation2 + $0x1a8] sm:$0xff]  ;;  %v1854_v23 = vadd.f32 %v3485_v18, %v644_v9  ;;  %v3488_v38 = vpop.f32.mrf.mxu1 }
 0x14a   : > { %1909 = vst.msk [vmem:[#allocation2 + $0x168] sm:$0xff] %vm268_vm1, %v1780_v16  ;;  %1973 = vst.msk [vmem:[#allocation2 + $0x368] sm:$0xff] %vm268_vm1, %v1844_v17  ;;  %v2105_v30 = vld [vmem:[#allocation2 + $0x370] sm:$0xff]  ;;  %v3211_v34 = vpack.c.bf16 %v2041_v29, %v2041_v29  ;;  %v3421_v17 = vpop.f32.mrf.mxu0  ;;  %v642_v19 = vld [vmem:[#allocation2 + $0x3a8] sm:$0xff] }
 0x14b   : > { %2677 = vst.msk [vmem:[%s4075_s26 + $0xa4] sm:$0xf] %vm2635_vm2, %v3206_v24  ;;  %2741 = vst.msk [vmem:[%s4075_s26 + $0x1a4] sm:$0xf] %vm2635_vm2, %v3270_v25  ;;  %v3275_v35 = vpack.c.bf16 %v2105_v30, %v2105_v30  ;;  %v2039_v39 = vld [vmem:[#allocation2 + $0x160] sm:$0xff]  ;;  %v1790_v22 = vadd.f32 %v3421_v17, %v580_v4  ;;  %v583_v24 = vld [vmem:[#allocation2 + $0x1d0] sm:$0xff]  ;;  %v1852_v33 = vadd.f32 %v1691_v28, %v642_v19  ;;  %v1704_v48 = vpop.f32.mrf.mxu1 }
 0x14c   : > { %1914 = vst.msk [vmem:[#allocation2 + $0x190] sm:$0xff] %vm268_vm1, %v1785_v26  ;;  %1978 = vst.msk [vmem:[#allocation2 + $0x390] sm:$0xff] %vm268_vm1, %v1849_v27  ;;  %v2103_v40 = vld [vmem:[#allocation2 + $0x360] sm:$0xff]  ;;  %v3209_v44 = vpack.c.bf16 %v2039_v39, %v2039_v39  ;;  %v2042_v49 = vld [vmem:[#allocation2 + $0x178] sm:$0xff]  ;;  %v1435_v27 = vpop.f32.mrf.mxu0 }
 0x14d   : > { %2682 = vst.msk [vmem:[%s4075_s26 + $0xb8] sm:$0xf] %vm2635_vm2, %v3211_v34  ;;  %2746 = vst.msk [vmem:[%s4075_s26 + $0x1b8] sm:$0xf] %vm2635_vm2, %v3275_v35  ;;  %v3273_v45 = vpack.c.bf16 %v2103_v40, %v2103_v40  ;;  %v2106_v50 = vld [vmem:[#allocation2 + $0x378] sm:$0xff]  ;;  %v3212_v54 = vpack.c.bf16 %v2042_v49, %v2042_v49  ;;  %v647_v29 = vld [vmem:[#allocation2 + $0x3d0] sm:$0xff]  ;;  %v1788_v32 = vadd.f32 %v1435_v27, %v578_v14  ;;  %v3489_v58 = vpop.f32.mrf.mxu1 }
 0x14e   : > { %1912 = vst.msk [vmem:[#allocation2 + $0x180] sm:$0xff] %vm268_vm1, %v1783_v36  ;;  %1976 = vst.msk [vmem:[#allocation2 + $0x380] sm:$0xff] %vm268_vm1, %v1847_v37  ;;  %v3276_v55 = vpack.c.bf16 %v2106_v50, %v2106_v50  ;;  %v581_v34 = vld [vmem:[#allocation2 + $0x1c0] sm:$0xff]  ;;  %v3424_v37 = vpop.f32.mrf.mxu0  ;;  %v1857_v43 = vadd.f32 %v3488_v38, %v647_v29  ;;  %v648_v49 = vld [vmem:[#allocation2 + $0x3d8] sm:$0xff] }
 0x14f   : > { %2680 = vst.msk [vmem:[%s4075_s26 + $0xb0] sm:$0xf] %vm2635_vm2, %v3209_v44  ;;  %2744 = vst.msk [vmem:[%s4075_s26 + $0x1b0] sm:$0xf] %vm2635_vm2, %v3273_v45  ;;  %v645_v39 = vld [vmem:[#allocation2 + $0x3c0] sm:$0xff]  ;;  %v1793_v42 = vadd.f32 %v3424_v37, %v583_v24  ;;  %v584_v44 = vld [vmem:[#allocation2 + $0x1d8] sm:$0xff]  ;;  %v1858_v63 = vadd.f32 %v3489_v58, %v648_v49  ;;  %v1707_v4 = vpop.f32.mrf.mxu1 }
 0x150   : > { %1915 = vst.msk [vmem:[#allocation2 + $0x198] sm:$0xff] %vm268_vm1, %v1786_v46  ;;  %1979 = vst.msk [vmem:[#allocation2 + $0x398] sm:$0xff] %vm268_vm1, %v1850_v47  ;;  %v1448_v47 = vpop.f32.mrf.mxu0  ;;  %v1855_v53 = vadd.f32 %v1704_v48, %v645_v39 }
 0x151   : > { %v2040_v59 = vld [vmem:[#allocation2 + $0x168] sm:$0xff]  ;;  %2683 = vst.msk [vmem:[%s4075_s26 + $0xbc] sm:$0xf] %vm2635_vm2, %v3212_v54  ;;  %2747 = vst.msk [vmem:[%s4075_s26 + $0x1bc] sm:$0xf] %vm2635_vm2, %v3276_v55  ;;  %v1791_v52 = vadd.f32 %v1448_v47, %v581_v34  ;;  %v3492_v14 = vpop.f32.mrf.mxu1 }
 0x152   : > { %v2104_v60 = vld [vmem:[#allocation2 + $0x368] sm:$0xff]  ;;  %v3210_v0 = vpack.c.bf16 %v2040_v59, %v2040_v59  ;;  %1913 = vst.msk [vmem:[#allocation2 + $0x188] sm:$0xff] %vm268_vm1, %v1784_v56  ;;  %1977 = vst.msk [vmem:[#allocation2 + $0x388] sm:$0xff] %vm268_vm1, %v1848_v57  ;;  %v3425_v57 = vpop.f32.mrf.mxu0 }
 0x153   : > { %v3274_v1 = vpack.c.bf16 %v2104_v60, %v2104_v60  ;;  %v2045_v5 = vld [vmem:[#allocation2 + $0x190] sm:$0xff]  ;;  %1918 = vst.msk [vmem:[#allocation2 + $0x1b0] sm:$0xff] %vm268_vm1, %v1789_v2  ;;  %1982 = vst.msk [vmem:[#allocation2 + $0x3b0] sm:$0xff] %vm268_vm1, %v1853_v3  ;;  %v582_v54 = vld [vmem:[#allocation2 + $0x1c8] sm:$0xff]  ;;  %v1794_v62 = vadd.f32 %v3425_v57, %v584_v44  ;;  %v1720_v24 = vpop.f32.mrf.mxu1 }
 0x154   : > { %v2109_v6 = vld [vmem:[#allocation2 + $0x390] sm:$0xff]  ;;  %2681 = vst.msk [vmem:[%s4075_s26 + $0xb4] sm:$0xf] %vm2635_vm2, %v3210_v0  ;;  %v3215_v10 = vpack.c.bf16 %v2045_v5, %v2045_v5  ;;  %v646_v59 = vld [vmem:[#allocation2 + $0x3c8] sm:$0xff]  ;;  %v1451_v3 = vpop.f32.mrf.mxu0 }
 0x155   : > { %2745 = vst.msk [vmem:[%s4075_s26 + $0x1b4] sm:$0xf] %vm2635_vm2, %v3274_v1  ;;  %v3279_v11 = vpack.c.bf16 %v2109_v6, %v2109_v6  ;;  %v2043_v15 = vld [vmem:[#allocation2 + $0x180] sm:$0xff]  ;;  %v587_v0 = vld [vmem:[#allocation2 + $0x1f0] sm:$0xff]  ;;  %v1792_v8 = vadd.f32 %v1451_v3, %v582_v54  ;;  %v1856_v9 = vadd.f32 %v1707_v4, %v646_v59  ;;  %v3493_v34 = vpop.f32.mrf.mxu1 }
 0x156   : > { %v2107_v16 = vld [vmem:[#allocation2 + $0x380] sm:$0xff]  ;;  %2686 = vst.msk [vmem:[%s4075_s26 + $0xc8] sm:$0xf] %vm2635_vm2, %v3215_v10  ;;  %v3213_v20 = vpack.c.bf16 %v2043_v15, %v2043_v15  ;;  %v651_v5 = vld [vmem:[#allocation2 + $0x3f0] sm:$0xff] }
 0x157   : > { %2750 = vst.msk [vmem:[%s4075_s26 + $0x1c8] sm:$0xf] %vm2635_vm2, %v3279_v11  ;;  %v3277_v21 = vpack.c.bf16 %v2107_v16, %v2107_v16  ;;  %v2046_v25 = vld [vmem:[#allocation2 + $0x198] sm:$0xff]  ;;  %v585_v10 = vld [vmem:[#allocation2 + $0x1e0] sm:$0xff]  ;;  %v1861_v19 = vadd.f32 %v3492_v14, %v651_v5 }
 0x158   : > { %1916 = vst.msk [vmem:[#allocation2 + $0x1a0] sm:$0xff] %vm268_vm1, %v1787_v12  ;;  %1980 = vst.msk [vmem:[#allocation2 + $0x3a0] sm:$0xff] %vm268_vm1, %v1851_v13  ;;  %v2110_v26 = vld [vmem:[#allocation2 + $0x398] sm:$0xff]  ;;  %v3216_v30 = vpack.c.bf16 %v2046_v25, %v2046_v25  ;;  %v3428_v13 = vpop.f32.mrf.mxu0  ;;  %v649_v15 = vld [vmem:[#allocation2 + $0x3e0] sm:$0xff] }
 0x159   : > { %2684 = vst.msk [vmem:[%s4075_s26 + $0xc0] sm:$0xf] %vm2635_vm2, %v3213_v20  ;;  %2748 = vst.msk [vmem:[%s4075_s26 + $0x1c0] sm:$0xf] %vm2635_vm2, %v3277_v21  ;;  %v3280_v31 = vpack.c.bf16 %v2110_v26, %v2110_v26  ;;  %v2044_v35 = vld [vmem:[#allocation2 + $0x188] sm:$0xff]  ;;  %v1797_v18 = vadd.f32 %v3428_v13, %v587_v0  ;;  %v588_v20 = vld [vmem:[#allocation2 + $0x1f8] sm:$0xff]  ;;  %v1859_v29 = vadd.f32 %v1720_v24, %v649_v15 }
 0x15a   : > { %1919 = vst.msk [vmem:[#allocation2 + $0x1b8] sm:$0xff] %vm268_vm1, %v1790_v22  ;;  %1983 = vst.msk [vmem:[#allocation2 + $0x3b8] sm:$0xff] %vm268_vm1, %v1854_v23  ;;  %v2108_v36 = vld [vmem:[#allocation2 + $0x388] sm:$0xff]  ;;  %v3214_v40 = vpack.c.bf16 %v2044_v35, %v2044_v35  ;;  %v2049_v45 = vld [vmem:[#allocation2 + $0x1b0] sm:$0xff]  ;;  %v1464_v23 = vpop.f32.mrf.mxu0 }
 0x15b   : > { %2687 = vst.msk [vmem:[%s4075_s26 + $0xcc] sm:$0xf] %vm2635_vm2, %v3216_v30  ;;  %2751 = vst.msk [vmem:[%s4075_s26 + $0x1cc] sm:$0xf] %vm2635_vm2, %v3280_v31  ;;  %v3278_v41 = vpack.c.bf16 %v2108_v36, %v2108_v36  ;;  %v2113_v46 = vld [vmem:[#allocation2 + $0x3b0] sm:$0xff]  ;;  %v3219_v50 = vpack.c.bf16 %v2049_v45, %v2049_v45  ;;  %v652_v25 = vld [vmem:[#allocation2 + $0x3f8] sm:$0xff]  ;;  %v1795_v28 = vadd.f32 %v1464_v23, %v585_v10 }
 0x15c   : > { %1917 = vst.msk [vmem:[#allocation2 + $0x1a8] sm:$0xff] %vm268_vm1, %v1788_v32  ;;  %1981 = vst.msk [vmem:[#allocation2 + $0x3a8] sm:$0xff] %vm268_vm1, %v1852_v33  ;;  %v3283_v51 = vpack.c.bf16 %v2113_v46, %v2113_v46  ;;  %v586_v30 = vld [vmem:[#allocation2 + $0x1e8] sm:$0xff]  ;;  %v3429_v33 = vpop.f32.mrf.mxu0  ;;  %v1862_v39 = vadd.f32 %v3493_v34, %v652_v25 }
 0x15d   : > { %2685 = vst.msk [vmem:[%s4075_s26 + $0xc4] sm:$0xf] %vm2635_vm2, %v3214_v40  ;;  %2749 = vst.msk [vmem:[%s4075_s26 + $0x1c4] sm:$0xf] %vm2635_vm2, %v3278_v41  ;;  %v650_v35 = vld [vmem:[#allocation2 + $0x3e8] sm:$0xff]  ;;  %v1798_v38 = vadd.f32 %v3429_v33, %v588_v20 }
 0x15e   : > { %1922 = vst.msk [vmem:[#allocation2 + $0x1d0] sm:$0xff] %vm268_vm1, %v1793_v42  ;;  %1986 = vst.msk [vmem:[#allocation2 + $0x3d0] sm:$0xff] %vm268_vm1, %v1857_v43  ;;  %v1467_v42 = vpop.f32.mrf.mxu0  ;;  %v1723_v43 = vpop.f32.mrf.mxu1 }
 0x15f   : > { %v2047_v55 = vld [vmem:[#allocation2 + $0x1a0] sm:$0xff]  ;;  %2690 = vst.msk [vmem:[%s4075_s26 + $0xd8] sm:$0xf] %vm2635_vm2, %v3219_v50  ;;  %2754 = vst.msk [vmem:[%s4075_s26 + $0x1d8] sm:$0xf] %vm2635_vm2, %v3283_v51  ;;  %v1796_v46 = vadd.f32 %v1467_v42, %v586_v30  ;;  %v1860_v47 = vadd.f32 %v1723_v43, %v650_v35 }
 0x160   : > { %v2111_v56 = vld [vmem:[#allocation2 + $0x3a0] sm:$0xff]  ;;  %v3217_v60 = vpack.c.bf16 %v2047_v55, %v2047_v55  ;;  %1920 = vst.msk [vmem:[#allocation2 + $0x1c0] sm:$0xff] %vm268_vm1, %v1791_v52  ;;  %1984 = vst.msk [vmem:[#allocation2 + $0x3c0] sm:$0xff] %vm268_vm1, %v1855_v53 }
 0x161   : > { %v3281_v61 = vpack.c.bf16 %v2111_v56, %v2111_v56  ;;  %v2050_v1 = vld [vmem:[#allocation2 + $0x1b8] sm:$0xff]  ;;  %1923 = vst.msk [vmem:[#allocation2 + $0x1d8] sm:$0xff] %vm268_vm1, %v1794_v62  ;;  %1987 = vst.msk [vmem:[#allocation2 + $0x3d8] sm:$0xff] %vm268_vm1, %v1858_v63 }
 0x162   : > { %v2114_v2 = vld [vmem:[#allocation2 + $0x3b8] sm:$0xff]  ;;  %2688 = vst.msk [vmem:[%s4075_s26 + $0xd0] sm:$0xf] %vm2635_vm2, %v3217_v60  ;;  %v3220_v6 = vpack.c.bf16 %v2050_v1, %v2050_v1 }
 0x163   : > { %2752 = vst.msk [vmem:[%s4075_s26 + $0x1d0] sm:$0xf] %vm2635_vm2, %v3281_v61  ;;  %v3284_v7 = vpack.c.bf16 %v2114_v2, %v2114_v2  ;;  %v2048_v11 = vld [vmem:[#allocation2 + $0x1a8] sm:$0xff] }
 0x164   : > { %v2112_v12 = vld [vmem:[#allocation2 + $0x3a8] sm:$0xff]  ;;  %2691 = vst.msk [vmem:[%s4075_s26 + $0xdc] sm:$0xf] %vm2635_vm2, %v3220_v6  ;;  %v3218_v16 = vpack.c.bf16 %v2048_v11, %v2048_v11 }
 0x165   : > { %2755 = vst.msk [vmem:[%s4075_s26 + $0x1dc] sm:$0xf] %vm2635_vm2, %v3284_v7  ;;  %v3282_v17 = vpack.c.bf16 %v2112_v12, %v2112_v12  ;;  %v2053_v21 = vld [vmem:[#allocation2 + $0x1d0] sm:$0xff] }
 0x166   : > { %1921 = vst.msk [vmem:[#allocation2 + $0x1c8] sm:$0xff] %vm268_vm1, %v1792_v8  ;;  %1985 = vst.msk [vmem:[#allocation2 + $0x3c8] sm:$0xff] %vm268_vm1, %v1856_v9  ;;  %v2117_v22 = vld [vmem:[#allocation2 + $0x3d0] sm:$0xff]  ;;  %v3223_v26 = vpack.c.bf16 %v2053_v21, %v2053_v21 }
 0x167   : > { %2689 = vst.msk [vmem:[%s4075_s26 + $0xd4] sm:$0xf] %vm2635_vm2, %v3218_v16  ;;  %2753 = vst.msk [vmem:[%s4075_s26 + $0x1d4] sm:$0xf] %vm2635_vm2, %v3282_v17  ;;  %v3287_v27 = vpack.c.bf16 %v2117_v22, %v2117_v22  ;;  %v2051_v31 = vld [vmem:[#allocation2 + $0x1c0] sm:$0xff] }
 0x168   : > { %1926 = vst.msk [vmem:[#allocation2 + $0x1f0] sm:$0xff] %vm268_vm1, %v1797_v18  ;;  %1990 = vst.msk [vmem:[#allocation2 + $0x3f0] sm:$0xff] %vm268_vm1, %v1861_v19  ;;  %v2115_v32 = vld [vmem:[#allocation2 + $0x3c0] sm:$0xff]  ;;  %v3221_v36 = vpack.c.bf16 %v2051_v31, %v2051_v31  ;;  %v2054_v40 = vld [vmem:[#allocation2 + $0x1d8] sm:$0xff] }
 0x169   : > { %2694 = vst.msk [vmem:[%s4075_s26 + $0xe8] sm:$0xf] %vm2635_vm2, %v3223_v26  ;;  %2758 = vst.msk [vmem:[%s4075_s26 + $0x1e8] sm:$0xf] %vm2635_vm2, %v3287_v27  ;;  %v3285_v37 = vpack.c.bf16 %v2115_v32, %v2115_v32  ;;  %v2118_v41 = vld [vmem:[#allocation2 + $0x3d8] sm:$0xff]  ;;  %v3224_v44 = vpack.c.bf16 %v2054_v40, %v2054_v40 }
 0x16a   : > { %1924 = vst.msk [vmem:[#allocation2 + $0x1e0] sm:$0xff] %vm268_vm1, %v1795_v28  ;;  %1988 = vst.msk [vmem:[#allocation2 + $0x3e0] sm:$0xff] %vm268_vm1, %v1859_v29  ;;  %v3288_v45 = vpack.c.bf16 %v2118_v41, %v2118_v41 }
 0x16b   : > { %2692 = vst.msk [vmem:[%s4075_s26 + $0xe0] sm:$0xf] %vm2635_vm2, %v3221_v36  ;;  %2756 = vst.msk [vmem:[%s4075_s26 + $0x1e0] sm:$0xf] %vm2635_vm2, %v3285_v37 }
 0x16c   : > { %1927 = vst.msk [vmem:[#allocation2 + $0x1f8] sm:$0xff] %vm268_vm1, %v1798_v38  ;;  %1991 = vst.msk [vmem:[#allocation2 + $0x3f8] sm:$0xff] %vm268_vm1, %v1862_v39 }
 0x16d   : > { %v2052_v48 = vld [vmem:[#allocation2 + $0x1c8] sm:$0xff]  ;;  %2695 = vst.msk [vmem:[%s4075_s26 + $0xec] sm:$0xf] %vm2635_vm2, %v3224_v44  ;;  %2759 = vst.msk [vmem:[%s4075_s26 + $0x1ec] sm:$0xf] %vm2635_vm2, %v3288_v45 }
 0x16e   : > { %v2116_v49 = vld [vmem:[#allocation2 + $0x3c8] sm:$0xff]  ;;  %v3222_v50 = vpack.c.bf16 %v2052_v48, %v2052_v48  ;;  %1925 = vst.msk [vmem:[#allocation2 + $0x1e8] sm:$0xff] %vm268_vm1, %v1796_v46  ;;  %1989 = vst.msk [vmem:[#allocation2 + $0x3e8] sm:$0xff] %vm268_vm1, %v1860_v47 }
 0x16f   : > { %v3286_v51 = vpack.c.bf16 %v2116_v49, %v2116_v49  ;;  %v2057_v52 = vld [vmem:[#allocation2 + $0x1f0] sm:$0xff] }
 0x170   : > { %v2121_v53 = vld [vmem:[#allocation2 + $0x3f0] sm:$0xff]  ;;  %2693 = vst.msk [vmem:[%s4075_s26 + $0xe4] sm:$0xf] %vm2635_vm2, %v3222_v50  ;;  %v3227_v54 = vpack.c.bf16 %v2057_v52, %v2057_v52 }
 0x171   : > { %2757 = vst.msk [vmem:[%s4075_s26 + $0x1e4] sm:$0xf] %vm2635_vm2, %v3286_v51  ;;  %v3291_v55 = vpack.c.bf16 %v2121_v53, %v2121_v53  ;;  %v2055_v56 = vld [vmem:[#allocation2 + $0x1e0] sm:$0xff] }
 0x172   : > { %v2119_v57 = vld [vmem:[#allocation2 + $0x3e0] sm:$0xff]  ;;  %2698 = vst.msk [vmem:[%s4075_s26 + $0xf8] sm:$0xf] %vm2635_vm2, %v3227_v54  ;;  %v3225_v58 = vpack.c.bf16 %v2055_v56, %v2055_v56 }
 0x173   : > { %2762 = vst.msk [vmem:[%s4075_s26 + $0x1f8] sm:$0xf] %vm2635_vm2, %v3291_v55  ;;  %v3289_v59 = vpack.c.bf16 %v2119_v57, %v2119_v57  ;;  %v2058_v60 = vld [vmem:[#allocation2 + $0x1f8] sm:$0xff] }
 0x174   : > { %v2122_v61 = vld [vmem:[#allocation2 + $0x3f8] sm:$0xff]  ;;  %2696 = vst.msk [vmem:[%s4075_s26 + $0xf0] sm:$0xf] %vm2635_vm2, %v3225_v58  ;;  %v3228_v62 = vpack.c.bf16 %v2058_v60, %v2058_v60 }
 0x175   : > { %2760 = vst.msk [vmem:[%s4075_s26 + $0x1f0] sm:$0xf] %vm2635_vm2, %v3289_v59  ;;  %v3292_v63 = vpack.c.bf16 %v2122_v61, %v2122_v61  ;;  %v2056_v0 = vld [vmem:[#allocation2 + $0x1e8] sm:$0xff] }
 0x176   : > { %v2120_v1 = vld [vmem:[#allocation2 + $0x3e8] sm:$0xff]  ;;  %2699 = vst.msk [vmem:[%s4075_s26 + $0xfc] sm:$0xf] %vm2635_vm2, %v3228_v62  ;;  %v3226_v2 = vpack.c.bf16 %v2056_v0, %v2056_v0 }
 0x177   : > { %2763 = vst.msk [vmem:[%s4075_s26 + $0x1fc] sm:$0xf] %vm2635_vm2, %v3292_v63  ;;  %v3290_v3 = vpack.c.bf16 %v2120_v1, %v2120_v1 }
 0x178   : > { %2697 = vst.msk [vmem:[%s4075_s26 + $0xf4] sm:$0xf] %vm2635_vm2, %v3226_v2 }
 0x179   : > { %2761 = vst.msk [vmem:[%s4075_s26 + $0x1f4] sm:$0xf] %vm2635_vm2, %v3290_v3 }
 0x17a PF: > { %s12_s11 = sadd.s32 1, %s3614_s11   ;;  %s4465_s9 = smov %s3610_s10 }
 0x17b   : > { %p9_p5 = scmp.ge.s32.totalorder %s12_s11, 18   ;;  %s4466_s10 = smov %s4468_s12 }
 0x17d   :  { %11 = sbr.rel (!%p9_p5) target bundleno = 2 (0x2), region = 69 }

</bundles_post_ra>
